<compile_context>
chip_gen: v7x
topology: tpu7x:2x2x1
jax: 0.10.0
libtpu: 0.0.40
codegen_flags: <defaults>
</compile_context>

<pallas_src>
import functools

import jax
import jax.numpy as jnp
from jax.experimental import pallas as pl
from jax.experimental.pallas import tpu as pltpu


# --------------------------------------------------------------------------- #
# Kernel
# --------------------------------------------------------------------------- #
def _attention_head_kernel(f_ref, w_ref, bw_ref, v_ref, o_ref, *,
                           s_valid, use_mxu_ctx):
    # f_ref : (B_BLK, S_pad, F_pad)  features block (native dtype)
    # w_ref : (F_pad, H)             W.weight.T (features dtype)
    # bw_ref: (1, H)                 W.bias (f32, post-accumulation path)
    # v_ref : (1, H)                 V.weight (f32)
    # o_ref : (B_BLK, F_pad)         context vectors for this batch block
    bblk, s_pad, nf = f_ref.shape
    h = w_ref.shape[1]

    f = f_ref[...]                                    # (B_BLK, S_pad, F_pad)
    # Layout-preserving: S_pad % 8 == 0 and the block spans the full lane dim.
    f2 = f.reshape(bblk * s_pad, nf)

    # ---- att = tanh(features @ W + bw): one big MXU matmul, f32 accumulate --
    att = jnp.tanh(
        jnp.dot(f2, w_ref[...], preferred_element_type=jnp.float32)
        + bw_ref[...]
    )                                                 # (B_BLK*S_pad, H) f32

    # ---- score = V(att), lane-dense (B_BLK, S_pad); V bias dropped ---------
    att3 = att.reshape(bblk, s_pad, h)
    score = jnp.sum(att3 * v_ref[...], axis=-1)       # (B_BLK, S_pad) f32

    # ---- mask padded sequence positions, softmax over the sequence axis ----
    if s_pad != s_valid:
        seq_idx = jax.lax.broadcasted_iota(jnp.int32, (bblk, s_pad), 1)
        score = jnp.where(seq_idx < s_valid, score, -jnp.inf)
    m = jnp.max(score, axis=-1, keepdims=True)        # (B_BLK, 1)
    e = jnp.exp(score - m)                            # (B_BLK, S_pad)
    attn_w = e * pl.reciprocal(jnp.sum(e, axis=-1, keepdims=True), approx=True)

    # ---- context = sum_s attn_w * features ----------------------------------
    if use_mxu_ctx:
        # Large S: keep the contraction on the MXU.
        ctx = jnp.einsum(
            "bqs,bsf->bqf",
            attn_w.astype(f.dtype)[:, None, :],       # (B_BLK, 1, S_pad)
            f,                                        # (B_BLK, S_pad, F_pad)
            preferred_element_type=jnp.float32,
        )[:, 0, :]
    else:
        # Small S: VPU multiply + sublane (XLU) reduce; avoids B_BLK serialized
        # M=1 MXU matmuls through the MRF on v5e/v6e and keeps attn_w in f32.
        ctx = jnp.sum(attn_w[:, :, None] * f.astype(jnp.float32), axis=1)

    o_ref[...] = ctx.astype(o_ref.dtype)              # lane-dense unmasked store


# --------------------------------------------------------------------------- #
# Chip-aware sizing helpers
# --------------------------------------------------------------------------- #
def _ceil_to(x, m):
    return -(-x // m) * m


def _tpu_info():
    try:
        return pltpu.get_tpu_info()
    except Exception:
        return None


def _vmem_capacity_bytes(info):
    if info is not None:
        cap = getattr(info, "vmem_capacity_bytes", None)
        try:
            cap = int(cap)
            if cap > 0:
                return cap
        except (TypeError, ValueError):
            pass
    return 64 * 2**20        # conservative fallback: v7x per-TC capacity


def _num_tensorcores(info):
    if info is not None:
        for attr in ("num_cores", "core_count", "num_tensorcores",
                     "tensorcore_count"):
            n = getattr(info, attr, None)
            try:
                n = int(n)
                if n > 0:
                    return n
            except (TypeError, ValueError):
                pass
    try:
        kind = jax.devices()[0].device_kind.lower()
    except Exception:
        kind = ""
    return 2 if "v7" in kind else 1     # v5e / v6e: single TensorCore


def _pick_blocking(B, s_pad, f_pad, itemsize, vmem_capacity, num_cores):
    """Returns (bblk, grid_steps, padded_B)."""
    # Per-batch-row VMEM footprint of one grid step (bytes):
    per_row = (
        2 * s_pad * f_pad * itemsize   # double-buffered feature input block
        + s_pad * 128 * 4              # f32 `att` intermediate, H lane-padded to 128
        + s_pad * f_pad * 4            # f32 context / softmax temporaries over features
        + 2 * f_pad * 4                # double-buffered output block
    )
    budget = int(0.30 * vmem_capacity)           # headroom for weights + compiler scratch
    cap = (budget // max(per_row, 1)) // 8 * 8
    cap = max(8, min(512, cap))

    if num_cores >= 2:
        # 2-TensorCore parts (v7x megacore): even number of grid steps so both
        # cores get equal work under dimension_semantics=("parallel",).
        half = -(-B // 2)
        steps = 2 * max(1, -(-half // cap))
    else:
        # Single TensorCore (v5e/v6e): the grid is a serial loop; minimize the
        # number of ~0.35us pipeline steps by taking the biggest block that fits.
        steps = max(1, -(-B // cap))

    bblk = _ceil_to(-(-B // steps), 8)           # ceil(B/steps), sublane multiple
    b_pad = steps * bblk
    return bblk, steps, b_pad


# --------------------------------------------------------------------------- #
# Wrapper
# --------------------------------------------------------------------------- #
def attention_head(features, w, bw, v):
    """features: (B, S, F) -> context (B, F).

    w : (F, H) = W.weight.T    bw: (1, H) = W.bias    v: (1, H) = V.weight
    (V.bias is softmax-invariant and intentionally not an input.)
    """
    B, S, Fdim = features.shape
    Fw, H = w.shape
    assert Fw == Fdim and bw.shape == (1, H) and v.shape == (1, H)

    dt = features.dtype
    itemsize = dt.itemsize

    # TPU-friendly padded shapes: sublane-multiple S, lane-multiple F.
    s_pad = _ceil_to(S, 8)
    f_pad = _ceil_to(Fdim, 128)

    info = _tpu_info()
    vmem_cap = _vmem_capacity_bytes(info)
    num_cores = _num_tensorcores(info)
    bblk, steps, b_pad = _pick_blocking(B, s_pad, f_pad, itemsize,
                                        vmem_cap, num_cores)

    feats = features
    if (b_pad, s_pad, f_pad) != (B, S, Fdim):
        feats = jnp.pad(features,
                        ((0, b_pad - B), (0, s_pad - S), (0, f_pad - Fdim)))
    w_p = w if f_pad == Fdim else jnp.pad(w, ((0, f_pad - Fdim), (0, 0)))
    # Keep both MXU operands in the features dtype (bf16-native path when the
    # model runs bf16); biases / V only touch the f32 post-accumulation path.
    w_p = w_p.astype(dt)
    bw_f32 = bw.astype(jnp.float32)
    v_f32 = v.astype(jnp.float32)

    use_mxu_ctx = s_pad > 64
    kernel = functools.partial(_attention_head_kernel,
                               s_valid=S, use_mxu_ctx=use_mxu_ctx)

    # Scoped-VMEM limit derived from the per-generation capacity (<= ~60%).
    vmem_limit = int(max(32 * 2**20, 0.60 * vmem_cap))

    cost = pl.CostEstimate(
        flops=int(2 * B * S * Fdim * H + 2 * B * S * H + 2 * B * S * Fdim),
        transcendentals=int(B * S * H + B * S),
        bytes_accessed=int(B * S * Fdim * itemsize
                           + Fdim * H * itemsize
                           + 2 * H * 4
                           + B * Fdim * itemsize),
    )

    out = pl.pallas_call(
        kernel,
        out_shape=jax.ShapeDtypeStruct((b_pad, f_pad), dt),
        grid_spec=pltpu.PrefetchScalarGridSpec(
            num_scalar_prefetch=0,
            grid=(steps,),
            in_specs=[
                pl.BlockSpec((bblk, s_pad, f_pad), lambda b: (b, 0, 0)),
                pl.BlockSpec((f_pad, H), lambda b: (0, 0)),
                pl.BlockSpec((1, H), lambda b: (0, 0)),
                pl.BlockSpec((1, H), lambda b: (0, 0)),
            ],
            out_specs=pl.BlockSpec((bblk, f_pad), lambda b: (b, 0)),
        ),
        compiler_params=pltpu.CompilerParams(
            dimension_semantics=("parallel",),
            vmem_limit_bytes=vmem_limit,
        ),
        cost_estimate=cost,
    )(feats, w_p, bw_f32, v_f32)

    if (b_pad, f_pad) != (B, Fdim):
        out = out[:B, :Fdim]
    return out


# --------------------------------------------------------------------------- #
# Reference (mirrors the PyTorch module exactly, V bias included)
# --------------------------------------------------------------------------- #
def attention_head_ref(features, w, bw, v, bv):
    att = jnp.tanh(features @ w + bw)                       # (B, S, H)
    score = jnp.einsum("bsh,oh->bso", att, v) + bv[0, 0]    # (B, S, 1)
    attn_w = jax.nn.softmax(score, axis=1)                  # softmax over seq
    return jnp.sum(attn_w * features, axis=1)               # (B, F)


if __name__ == "__main__":
    B, S = 16, 16        # batch, sequence length
    F, H = 128, 32       # in_features (lane-dense), hidden_dim

    key = jax.random.PRNGKey(0)
    k_x, k_w, k_bw, k_v, k_bv = jax.random.split(key, 5)

    features = jax.random.normal(k_x, (B, S, F), dtype=jnp.float32)

    # Deterministic parameter init (W pre-transposed for x @ W; V kept in its
    # native PyTorch (1, H) row layout).
    w = jax.random.normal(k_w, (F, H), dtype=jnp.float32) * 0.1    # W.weight.T
    bw = jax.random.normal(k_bw, (1, H), dtype=jnp.float32) * 0.1  # W.bias
    v = jax.random.normal(k_v, (1, H), dtype=jnp.float32) * 0.1    # V.weight
    bv = jax.random.normal(k_bv, (1, 1), dtype=jnp.float32) * 0.1  # V.bias (softmax-invariant)

    out = attention_head(features, w, bw, v)
    out = jax.block_until_ready(out)

    ref = attention_head_ref(features, w, bw, v, bv)
    assert out.shape == (B, F)
    # approx=True reciprocal in the softmax denominator => slightly relaxed tol.
    assert jnp.allclose(out, ref, atol=5e-3, rtol=5e-3), "mismatch vs reference"

    print("KERNEL_OK")
</pallas_src>

<mosaic_0001>
module attributes {stable_mosaic.version = 11 : i64} {
  func.func @_attention_head_kernel(%arg0: i32, %arg1: memref<16x16x128xf32, #tpu.memory_space<vmem>>, %arg2: memref<128x32xf32, #tpu.memory_space<vmem>>, %arg3: memref<1x32xf32, #tpu.memory_space<vmem>>, %arg4: memref<1x32xf32, #tpu.memory_space<vmem>>, %arg5: memref<16x128xf32, #tpu.memory_space<vmem>>) attributes {dimension_semantics = [#tpu.dimension_semantics<parallel>], iteration_bounds = array<i64: 1>, scalar_prefetch = 0 : i64, scratch_operands = 0 : i64, tpu.core_type = #tpu.core_type<tc>, window_params = [{transform_indices = @transform_0, window_bounds = array<i64: 16, 16, 128>}, {pipeline_mode = #tpu.pipeline_mode<synchronous>, transform_indices = @transform_1, window_bounds = array<i64: 128, 32>}, {pipeline_mode = #tpu.pipeline_mode<synchronous>, transform_indices = @transform_2, window_bounds = array<i64: 1, 32>}, {pipeline_mode = #tpu.pipeline_mode<synchronous>, transform_indices = @transform_3, window_bounds = array<i64: 1, 32>}, {transform_indices = @transform_4, window_bounds = array<i64: 16, 128>}]} {
    %c0 = arith.constant 0 : index
    %c0_0 = arith.constant 0 : index
    %c0_1 = arith.constant 0 : index
    %0 = vector.load %arg1[%c0, %c0_0, %c0_1] : memref<16x16x128xf32, #tpu.memory_space<vmem>>, vector<16x16x128xf32>
    %1 = vector.shape_cast %0 : vector<16x16x128xf32> to vector<256x128xf32>
    %c0_2 = arith.constant 0 : index
    %c0_3 = arith.constant 0 : index
    %2 = vector.load %arg2[%c0_2, %c0_3] : memref<128x32xf32, #tpu.memory_space<vmem>>, vector<128x32xf32>
    %cst = arith.constant dense<0.000000e+00> : vector<256x32xf32>
    %3 = tpu.matmul %1, %2, %cst {dimension_numbers = #tpu.dot_dimension_numbers<[1], [0], [0], [1], [0, 0, 1, 1], [], []>} : vector<256x128xf32>, vector<128x32xf32>, vector<256x32xf32> -> vector<256x32xf32>
    %c0_4 = arith.constant 0 : index
    %c0_5 = arith.constant 0 : index
    %4 = vector.load %arg3[%c0_4, %c0_5] : memref<1x32xf32, #tpu.memory_space<vmem>>, vector<1x32xf32>
    %5 = vector.broadcast %4 : vector<1x32xf32> to vector<256x32xf32>
    %6 = arith.addf %3, %5 : vector<256x32xf32>
    %7 = math.tanh %6 : vector<256x32xf32>
    %8 = vector.shape_cast %7 : vector<256x32xf32> to vector<16x16x32xf32>
    %c0_6 = arith.constant 0 : index
    %c0_7 = arith.constant 0 : index
    %9 = vector.load %arg4[%c0_6, %c0_7] : memref<1x32xf32, #tpu.memory_space<vmem>>, vector<1x32xf32>
    %10 = vector.shape_cast %9 : vector<1x32xf32> to vector<1x1x32xf32>
    %11 = vector.broadcast %10 : vector<1x1x32xf32> to vector<16x16x32xf32>
    %12 = arith.mulf %8, %11 : vector<16x16x32xf32>
    %cst_8 = arith.constant dense<0.000000e+00> : vector<16x16xf32>
    %13 = vector.multi_reduction <add>, %12, %cst_8 [2] : vector<16x16x32xf32> to vector<16x16xf32>
    %cst_9 = arith.constant dense<0xFF800000> : vector<16xf32>
    %14 = vector.multi_reduction <maximumf>, %13, %cst_9 [1] : vector<16x16xf32> to vector<16xf32>
    %15 = vector.shape_cast %14 : vector<16xf32> to vector<16x1xf32>
    %16 = vector.broadcast %15 : vector<16x1xf32> to vector<16x16xf32>
    %17 = arith.subf %13, %16 : vector<16x16xf32>
    %18 = math.exp %17 : vector<16x16xf32>
    %cst_10 = arith.constant dense<0.000000e+00> : vector<16xf32>
    %19 = vector.multi_reduction <add>, %18, %cst_10 [1] : vector<16x16xf32> to vector<16xf32>
    %20 = vector.shape_cast %19 : vector<16xf32> to vector<16x1xf32>
    %21 = tpu.reciprocal %20 {approx = true} : vector<16x1xf32> -> vector<16x1xf32>
    %22 = vector.broadcast %21 : vector<16x1xf32> to vector<16x16xf32>
    %23 = arith.mulf %18, %22 : vector<16x16xf32>
    %24 = vector.shape_cast %23 : vector<16x16xf32> to vector<16x16x1xf32>
    %25 = vector.broadcast %24 : vector<16x16x1xf32> to vector<16x16x128xf32>
    %26 = arith.mulf %25, %0 : vector<16x16x128xf32>
    %cst_11 = arith.constant dense<0.000000e+00> : vector<16x128xf32>
    %27 = vector.multi_reduction <add>, %26, %cst_11 [1] : vector<16x16x128xf32> to vector<16x128xf32>
    %c0_12 = arith.constant 0 : index
    %c0_13 = arith.constant 0 : index
    %28 = vector.load %arg5[%c0_12, %c0_13] : memref<16x128xf32, #tpu.memory_space<vmem>>, vector<16x128xf32>
    tpu.vector_store %arg5[%c0_12, %c0_13], %27 {strides = array<i32>} : memref<16x128xf32, #tpu.memory_space<vmem>>, vector<16x128xf32>,
    return
  }
  func.func @transform_0(%arg0: i32) -> (i32, i32, i32) {
    %c0_i32 = arith.constant 0 : i32
    %c0_i32_0 = arith.constant 0 : i32
    %c0_i32_1 = arith.constant 0 : i32
    return %arg0, %c0_i32, %c0_i32_0 : i32, i32, i32
  }
  func.func @transform_1(%arg0: i32) -> (i32, i32) {
    %c0_i32 = arith.constant 0 : i32
    %c0_i32_0 = arith.constant 0 : i32
    %c0_i32_1 = arith.constant 0 : i32
    return %c0_i32, %c0_i32_0 : i32, i32
  }
  func.func @transform_2(%arg0: i32) -> (i32, i32) {
    %c0_i32 = arith.constant 0 : i32
    %c0_i32_0 = arith.constant 0 : i32
    %c0_i32_1 = arith.constant 0 : i32
    return %c0_i32, %c0_i32_0 : i32, i32
  }
  func.func @transform_3(%arg0: i32) -> (i32, i32) {
    %c0_i32 = arith.constant 0 : i32
    %c0_i32_0 = arith.constant 0 : i32
    %c0_i32_1 = arith.constant 0 : i32
    return %c0_i32, %c0_i32_0 : i32, i32
  }
  func.func @transform_4(%arg0: i32) -> (i32, i32) {
    %c0_i32 = arith.constant 0 : i32
    %c0_i32_0 = arith.constant 0 : i32
    return %arg0, %c0_i32 : i32, i32
  }
}

</mosaic_0001>

<bundles_post_ra>
// kernel: tpu_custom_call.1
= control target key start
LH: loop header
LB: loop body
LE: loop exit
PB: predicated region body
PF: predicated region fallthrough
CT: control target
= control target key end

     0   :  { %9 = vsyncpa [#allocation3], 0  ;;  %s2780_s0 = inlined_call_operand.hbm [shape: f32[16,16,128], index: 0, kind: input, shape index: {}]   ;;  %s2781_s1 = inlined_call_operand.vmem [shape: f32[128,32], index: 1, kind: input, shape index: {}]   ;;  %s2782_s2 = inlined_call_operand.vmem [shape: f32[1,32], index: 2, kind: input, shape index: {}]   ;;  %s2783_s3 = inlined_call_operand.vmem [shape: f32[1,32], index: 3, kind: input, shape index: {}]   ;;  %s2784_s4 = inlined_call_operand.hbm [shape: f32[16,128], index: 4, kind: output, shape index: {}]  }
   0x1   :  { %10 = vsyncpa [#allocation4], 0  ;;  %s2030_s15 = smov [#allocation2]   ;;  %s1982_s19 = scalar_lea.hbm %s2780_s0, 4096 }
   0x2   :  { %s16_s16 = sshll.u32 %s2030_s15, 4  ;;  %p1983_p0 = scmp.ne.s32.totalorder %s2780_s0, %s1982_s19  ;;  %s17_s16 = int_to_ptr.vmem [resolvable:$true] %s16_s16 }
   0x3   :  { %p1986_p1 = scmp.lt.u32.totalorder %s1982_s19, %s2780_s0 }
   0x5   :  { %p1988_p2 = pnand %p1986_p1, %p1983_p0 }
   0x7   :  { %1991 = shalt.err (!%p1988_p2)
}
   0x8   :  { %s1992_s24 = scalar_lea.vmem %s17_s16, 4096  ;;  %p1997_p4 = scmp.lt.s32.totalorder %s17_s16, %s17_s16 }
   0x9   :  { %p1993_p3 = scmp.ne.s32.totalorder %s17_s16, %s1992_s24  ;;  %p1998_p5 = scmp.lt.s32.totalorder %s1992_s24, %s1992_s24 }
   0xb   :  { %p1999_p6 = por %p1998_p5, %p1997_p4 }
   0xd   :  { %p2000_p7 = pnand %p1999_p6, %p1993_p3 }
   0xf   :  { %2003 = shalt.err (!%p2000_p7)
}
  0x10   :  { %s2031_s25 = smov 128   ;;  %s2032_s26 = smov 8  }
  0x11   :  { %22 = dma.hbm_to_vmem [thread:$0]  %s2780_s0, 4096, %s17_s16, [#allocation3], %s2031_s25, %s2031_s25, %s2032_s26  }
  0x12   :  { %2026 = dma.done.wait [#allocation3], 4096  }
  0x13   :  { %2027 = vsyncadd [#allocation3], 4294963200  ;;  %v64_v0 = vld [vmem:[%s2781_s1] sm:$0xff]  ;;  %v65_v1 = vld [vmem:[%s2781_s1 + $0x8] sm:$0xff]  ;;  %vm383_vm0 = vcmask 261120   ;;  %vm523_vm1 = vcmask 130112  }
  0x14   :  { %v66_v2 = vld [vmem:[%s2781_s1 + $0x10] sm:$0xff]  ;;  %v1763_v3 = vpack.c.bf16 %v65_v1, %v64_v0  ;;  %v67_v4 = vld [vmem:[%s2781_s1 + $0x18] sm:$0xff]  ;;  %v68_v6 = vld [vmem:[%s2781_s1 + $0x20] sm:$0xff]  ;;  %vm660_vm2 = vcmask 1041409   ;;  %vm662_vm3 = vcmask 1042434   ;;  %vm664_vm4 = vcmask 1043459  }
  0x15   :  { %v1767_v5 = vpack.c.bf16 %v67_v4, %v66_v2  ;;  %v69_v7 = vld [vmem:[%s2781_s1 + $0x28] sm:$0xff]  ;;  %v32_v9 = vld [vmem:[#allocation2] sm:$0xff]  ;;  %v70_v11 = vld [vmem:[%s2781_s1 + $0x30] sm:$0xff]  ;;  %vm666_vm5 = vcmask 1044484   ;;  %vm668_vm6 = vcmask 1045509   ;;  %vm670_vm7 = vcmask 1046534  }
  0x16   :  { %1764 = vmatprep.subr.bf16.mxu0 %v1763_v3  ;;  %1795 = vmatprep.subr.bf16.mxu1 %v1763_v3  ;;  %v1771_v8 = vpack.c.bf16 %v69_v7, %v68_v6  ;;  %v48_v10 = vld [vmem:[#allocation2 + $0x80] sm:$0xff]  ;;  %v71_v12 = vld [vmem:[%s2781_s1 + $0x38] sm:$0xff]  ;;  %v73_v15 = vld [vmem:[%s2781_s1 + $0x48] sm:$0xff]  ;;  %vm672_vm8 = vcmask 1047559   ;;  %vm683_vm9 = vcmask 130048  }
  0x17   :  { %1766 = vmatpush3.bf16.msra.mxu0 %v1763_v3  ;;  %1803 = vmatpush3.bf16.msra.mxu1 %v1763_v3  ;;  %v1775_v13 = vpack.c.bf16 %v71_v12, %v70_v11  ;;  %v72_v14 = vld [vmem:[%s2781_s1 + $0x40] sm:$0xff]  ;;  %v74_v17 = vld [vmem:[%s2781_s1 + $0x50] sm:$0xff]  ;;  %v75_v18 = vld [vmem:[%s2781_s1 + $0x58] sm:$0xff] }
  0x18   :  { %1768 = vmatprep.subr.bf16.mxu0 %v1767_v5  ;;  %1796 = vmatprep.subr.bf16.mxu1 %v1767_v5  ;;  %v1779_v16 = vpack.c.bf16 %v73_v15, %v72_v14  ;;  %v1783_v19 = vpack.c.bf16 %v75_v18, %v74_v17  ;;  %v76_v20 = vld [vmem:[%s2781_s1 + $0x60] sm:$0xff]  ;;  %v77_v21 = vld [vmem:[%s2781_s1 + $0x68] sm:$0xff]  ;;  %v78_v23 = vld [vmem:[%s2781_s1 + $0x70] sm:$0xff] }
  0x19   :  { %1715 = vmatprep.mubr.f32.mxu0 %v32_v9  ;;  %1739 = vmatprep.mubr.f32.mxu1 %v48_v10  ;;  %v1787_v22 = vpack.c.bf16 %v77_v21, %v76_v20  ;;  %v79_v24 = vld [vmem:[%s2781_s1 + $0x78] sm:$0xff]  ;;  %v33_v26 = vld [vmem:[#allocation2 + $0x8] sm:$0xff]  ;;  %v34_v28 = vld [vmem:[#allocation2 + $0x10] sm:$0xff] }
  0x1a   :  { %v1791_v25 = vpack.c.bf16 %v79_v24, %v78_v23  ;;  %v49_v27 = vld [vmem:[#allocation2 + $0x88] sm:$0xff]  ;;  %v50_v29 = vld [vmem:[#allocation2 + $0x90] sm:$0xff]  ;;  %v35_v30 = vld [vmem:[#allocation2 + $0x18] sm:$0xff] }
  0x1b   :  { %1770 = vmatpush3.bf16.msra.mxu0 %v1767_v5  ;;  %1804 = vmatpush3.bf16.msra.mxu1 %v1767_v5  ;;  %v51_v31 = vld [vmem:[#allocation2 + $0x98] sm:$0xff]  ;;  %v36_v32 = vld [vmem:[#allocation2 + $0x20] sm:$0xff]  ;;  %v37_v34 = vld [vmem:[#allocation2 + $0x28] sm:$0xff] }
  0x1c   :  { %1772 = vmatprep.subr.bf16.mxu0 %v1771_v8  ;;  %1797 = vmatprep.subr.bf16.mxu1 %v1771_v8  ;;  %v52_v33 = vld [vmem:[#allocation2 + $0xa0] sm:$0xff]  ;;  %v53_v35 = vld [vmem:[#allocation2 + $0xa8] sm:$0xff]  ;;  %v38_v36 = vld [vmem:[#allocation2 + $0x30] sm:$0xff] }
  0x1d   :  { %v54_v37 = vld [vmem:[#allocation2 + $0xb0] sm:$0xff]  ;;  %v39_v38 = vld [vmem:[#allocation2 + $0x38] sm:$0xff]  ;;  %v40_v40 = vld [vmem:[#allocation2 + $0x40] sm:$0xff] }
  0x1e   :  { %v55_v39 = vld [vmem:[#allocation2 + $0xb8] sm:$0xff]  ;;  %v56_v41 = vld [vmem:[#allocation2 + $0xc0] sm:$0xff]  ;;  %v41_v42 = vld [vmem:[#allocation2 + $0x48] sm:$0xff] }
  0x1f   :  { %1774 = vmatpush3.bf16.msra.mxu0 %v1771_v8  ;;  %1805 = vmatpush3.bf16.msra.mxu1 %v1771_v8  ;;  %v57_v43 = vld [vmem:[#allocation2 + $0xc8] sm:$0xff]  ;;  %v42_v44 = vld [vmem:[#allocation2 + $0x50] sm:$0xff]  ;;  %v43_v46 = vld [vmem:[#allocation2 + $0x58] sm:$0xff] }
  0x20   :  { %1776 = vmatprep.subr.bf16.mxu0 %v1775_v13  ;;  %1798 = vmatprep.subr.bf16.mxu1 %v1775_v13  ;;  %v58_v45 = vld [vmem:[#allocation2 + $0xd0] sm:$0xff]  ;;  %v59_v47 = vld [vmem:[#allocation2 + $0xd8] sm:$0xff]  ;;  %v44_v48 = vld [vmem:[#allocation2 + $0x60] sm:$0xff] }
  0x21   :  { %v60_v49 = vld [vmem:[#allocation2 + $0xe0] sm:$0xff]  ;;  %v45_v50 = vld [vmem:[#allocation2 + $0x68] sm:$0xff]  ;;  %v46_v52 = vld [vmem:[#allocation2 + $0x70] sm:$0xff] }
  0x22   :  { %v61_v51 = vld [vmem:[#allocation2 + $0xe8] sm:$0xff]  ;;  %v62_v53 = vld [vmem:[#allocation2 + $0xf0] sm:$0xff]  ;;  %v47_v54 = vld [vmem:[#allocation2 + $0x78] sm:$0xff] }
  0x23   :  { %1778 = vmatpush3.bf16.msra.mxu0 %v1775_v13  ;;  %1806 = vmatpush3.bf16.msra.mxu1 %v1775_v13  ;;  %v63_v55 = vld [vmem:[#allocation2 + $0xf8] sm:$0xff]  ;;  %v2126_v56 = vld [vmem:[%s2782_s2] ss:$0 sm:$0xff] }
  0x24   :  { %1780 = vmatprep.subr.bf16.mxu0 %v1779_v16  ;;  %1799 = vmatprep.subr.bf16.mxu1 %v1779_v16  ;;  %v2141_v15 = vld [vmem:[%s2783_s3] ss:$0 sm:$0xff]  ;;  %s2034_s3 = smov [#allocation5]  }
  0x25   :  { %s1621_s11 = sshll.u32 %s2034_s3, 4  ;;  %s1622_s11 = int_to_ptr.vmem [resolvable:$true] %s1621_s11 }
  0x26   :  { %s2004_s12 = scalar_lea.vmem %s1622_s11, 256  ;;  %p2009_p9 = scmp.lt.s32.totalorder %s1622_s11, %s1622_s11 }
  0x27   :  { %1782 = vmatpush3.bf16.msra.mxu0 %v1779_v16  ;;  %1807 = vmatpush3.bf16.msra.mxu1 %v1779_v16  ;;  %p2005_p8 = scmp.ne.s32.totalorder %s1622_s11, %s2004_s12  ;;  %p2010_p10 = scmp.lt.s32.totalorder %s2004_s12, %s2004_s12 }
  0x28   :  { %1784 = vmatprep.subr.bf16.mxu0 %v1783_v19  ;;  %1800 = vmatprep.subr.bf16.mxu1 %v1783_v19 }
  0x29   :  { %p2011_p11 = por %p2010_p10, %p2009_p9 }
  0x2b   :  { %1786 = vmatpush3.bf16.msra.mxu0 %v1783_v19  ;;  %1808 = vmatpush3.bf16.msra.mxu1 %v1783_v19  ;;  %p2012_p12 = pnand %p2011_p11, %p2005_p8 }
  0x2c   :  { %1788 = vmatprep.subr.bf16.mxu0 %v1787_v22  ;;  %1801 = vmatprep.subr.bf16.mxu1 %v1787_v22 }
  0x2f   :  { %1790 = vmatpush3.bf16.msra.mxu0 %v1787_v22  ;;  %1809 = vmatpush3.bf16.msra.mxu1 %v1787_v22 }
  0x30   :  { %1792 = vmatprep.subr.bf16.mxu0 %v1791_v25  ;;  %1802 = vmatprep.subr.bf16.mxu1 %v1791_v25 }
  0x33   :  { %1794 = vmatpush3.bf16.msra.mxu0 %v1791_v25  ;;  %1810 = vmatpush3.bf16.msra.mxu1 %v1791_v25 }
  0x36   :  { %1716 = vmatmul.mubr.f32.vlgmr.msra.gmra.mrb[0].mxu0 %v33_v26  ;;  %1740 = vmatmul.mubr.f32.vlgmr.msra.gmra.mrb[0].mxu1 %v49_v27 }
  0x37   :  { %1718 = vmatprep.mubr.f32.mxu0 %v34_v28  ;;  %1742 = vmatprep.mubr.f32.mxu1 %v50_v29 }
  0x3a   :  { %1719 = vmatmul.mubr.f32.gmra.mrb[2].mxu0 %v35_v30  ;;  %1743 = vmatmul.mubr.f32.gmra.mrb[2].mxu1 %v51_v31 }
  0x3b   :  { %1721 = vmatprep.mubr.f32.mxu0 %v36_v32  ;;  %1745 = vmatprep.mubr.f32.mxu1 %v52_v33 }
  0x3e   :  { %1722 = vmatmul.mubr.f32.gmra.mrb[4].mxu0 %v37_v34  ;;  %1746 = vmatmul.mubr.f32.gmra.mrb[4].mxu1 %v53_v35 }
  0x3f   :  { %1724 = vmatprep.mubr.f32.mxu0 %v38_v36  ;;  %1748 = vmatprep.mubr.f32.mxu1 %v54_v37 }
  0x42   :  { %1725 = vmatmul.mubr.f32.gmra.mrb[6].mxu0 %v39_v38  ;;  %1749 = vmatmul.mubr.f32.gmra.mrb[6].mxu1 %v55_v39 }
  0x43   :  { %1727 = vmatprep.mubr.f32.mxu0 %v40_v40  ;;  %1751 = vmatprep.mubr.f32.mxu1 %v56_v41 }
  0x46   :  { %1728 = vmatmul.mubr.f32.gmra.mrb[8].mxu0 %v41_v42  ;;  %1752 = vmatmul.mubr.f32.gmra.mrb[8].mxu1 %v57_v43 }
  0x47   :  { %1730 = vmatprep.mubr.f32.mxu0 %v42_v44  ;;  %1754 = vmatprep.mubr.f32.mxu1 %v58_v45 }
  0x4a   :  { %1731 = vmatmul.mubr.f32.gmra.mrb[10].mxu0 %v43_v46  ;;  %1755 = vmatmul.mubr.f32.gmra.mrb[10].mxu1 %v59_v47 }
  0x4b   :  { %1733 = vmatprep.mubr.f32.mxu0 %v44_v48  ;;  %1757 = vmatprep.mubr.f32.mxu1 %v60_v49 }
  0x4e   :  { %1734 = vmatmul.mubr.f32.gmra.mrb[12].mxu0 %v45_v50  ;;  %1758 = vmatmul.mubr.f32.gmra.mrb[12].mxu1 %v61_v51 }
  0x4f   :  { %1736 = vmatprep.mubr.f32.mxu0 %v46_v52  ;;  %1760 = vmatprep.mubr.f32.mxu1 %v62_v53 }
  0x52   :  { %1737 = vmatmul.mubr.f32.gmra.mrb[14].mxu0 %v47_v54  ;;  %1761 = vmatmul.mubr.f32.gmra.mrb[14].mxu1 %v63_v55 }
 0x109   :  { %v1717_v57 = vpop.f32.mrb[0].mxu0  ;;  %v1741_v58 = vpop.f32.mrb[0].mxu1 }
 0x10a   :  { %v159_v59 = vadd.f32 %v1717_v57, %v2126_v56  ;;  %v239_v60 = vadd.f32 %v1741_v58, %v2126_v56  ;;  %v153_v61 = vpop.f32.mrb[1].mxu0  ;;  %v233_v62 = vpop.f32.mrb[1].mxu1 }
 0x10b   :  { %v154_v63 = vadd.f32 %v2126_v56, %v153_v61  ;;  %v234_v0 = vadd.f32 %v2126_v56, %v233_v62 }
 0x10c   :  { %1818 = vtanh.f32 %v159_v59 }
 0x10d   :  { %1820 = vtanh.f32 %v239_v60  ;;  %v1720_v1 = vpop.f32.mrb[2].mxu0  ;;  %v1744_v2 = vpop.f32.mrb[2].mxu1 }
 0x10e   :  { %1822 = vtanh.f32 %v154_v63  ;;  %v169_v3 = vadd.f32 %v1720_v1, %v2126_v56  ;;  %v163_v4 = vpop.f32.mrb[3].mxu0  ;;  %v249_v5 = vadd.f32 %v1744_v2, %v2126_v56  ;;  %v243_v6 = vpop.f32.mrb[3].mxu1 }
 0x10f   :  { %1824 = vtanh.f32 %v234_v0  ;;  %v244_v7 = vadd.f32 %v2126_v56, %v243_v6  ;;  %v164_v8 = vadd.f32 %v2126_v56, %v163_v4 }
 0x110   :  { %1826 = vtanh.f32 %v169_v3 }
 0x111   :  { %v1723_v9 = vpop.f32.mrb[4].mxu0  ;;  %v1747_v10 = vpop.f32.mrb[4].mxu1  ;;  %1828 = vtanh.f32 %v249_v5 }
 0x112   :  { %v173_v11 = vpop.f32.mrb[5].mxu0  ;;  %v253_v12 = vpop.f32.mrb[5].mxu1  ;;  %v179_v13 = vadd.f32 %v1723_v9, %v2126_v56  ;;  %1830 = vtanh.f32 %v244_v7  ;;  %v259_v24 = vadd.f32 %v1747_v10, %v2126_v56 }
 0x113   :  { %v174_v14 = vadd.f32 %v2126_v56, %v173_v11  ;;  %1832 = vtanh.f32 %v164_v8  ;;  %v254_v19 = vadd.f32 %v2126_v56, %v253_v12 }
 0x115   :  { %v1726_v16 = vpop.f32.mrb[6].mxu0  ;;  %v1750_v17 = vpop.f32.mrb[6].mxu1  ;;  %1834 = vtanh.f32 %v174_v14 }
 0x116   :  { %v1819_v18 = vpop.eup %1818  ;;  %v183_v20 = vpop.f32.mrb[7].mxu0  ;;  %1836 = vtanh.f32 %v179_v13  ;;  %v189_v38 = vadd.f32 %v1726_v16, %v2126_v56  ;;  %v269_v51 = vadd.f32 %v1750_v17, %v2126_v56 }
 0x117   :  { %v263_v21 = vpop.f32.mrb[7].mxu1  ;;  %v1821_v22 = vpop.eup %1820  ;;  %v352_v23 = vmul.f32 %v1819_v18, %v2141_v15  ;;  %1838 = vtanh.f32 %v254_v19  ;;  %v184_v34 = vadd.f32 %v2126_v56, %v183_v20 }
 0x118   :  { %v1823_v25 = vpop.eup %1822  ;;  %v368_v26 = vmul.f32 %v1821_v22, %v2141_v15  ;;  %1840 = vtanh.f32 %v259_v24  ;;  %v264_v47 = vadd.f32 %v2126_v56, %v263_v21 }
 0x119   :  { %v1825_v27 = vpop.eup %1824  ;;  %v387_v28 = vsel %vm383_vm0, %v352_v23, 0.0  ;;  %v351_v29 = vmul.f32 %v1823_v25, %v2141_v15  ;;  %v1729_v30 = vpop.f32.mrb[8].mxu0  ;;  %1842 = vtanh.f32 %v184_v34 }
 0x11a   :  { %v1753_v31 = vpop.f32.mrb[8].mxu1  ;;  %v1827_v32 = vpop.eup %1826  ;;  %v435_v33 = vsel %vm383_vm0, %v368_v26, 0.0  ;;  %388 = vadd.xlane.f32.xlu0 %v387_v28  ;;  %v367_v43 = vmul.f32 %v1825_v27, %v2141_v15  ;;  %1844 = vtanh.f32 %v189_v38  ;;  %v199_v0 = vadd.f32 %v1729_v30, %v2126_v56 }
 0x11b   :  { %v193_v35 = vpop.f32.mrb[9].mxu0  ;;  %v273_v36 = vpop.f32.mrb[9].mxu1  ;;  %436 = vadd.xlane.f32.xlu1 %v435_v33  ;;  %v354_v37 = vmul.f32 %v1827_v32, %v2141_v15  ;;  %v384_v41 = vsel %vm383_vm0, %v351_v29, 0.0  ;;  %1846 = vtanh.f32 %v264_v47  ;;  %v279_v13 = vadd.f32 %v1753_v31, %v2126_v56 }
 0x11c   :  { %v1829_v39 = vpop.eup %1828  ;;  %v432_v55 = vsel %vm383_vm0, %v367_v43, 0.0  ;;  %v194_v61 = vadd.f32 %v2126_v56, %v193_v35  ;;  %1848 = vtanh.f32 %v269_v51  ;;  %v274_v9 = vadd.f32 %v2126_v56, %v273_v36 }
 0x11d   :  { %v393_v40 = vsel %vm383_vm0, %v354_v37, 0.0  ;;  %v370_v42 = vmul.f32 %v1829_v39, %v2141_v15  ;;  %v1732_v44 = vpop.f32.mrb[10].mxu0  ;;  %v2157_v45 = vpop.f32.mrb[10].mxu1 }
 0x11e   :  { %v1831_v46 = vpop.eup %1830  ;;  %385 = vadd.xlane.f32.xlu0 %v384_v41  ;;  %v203_v48 = vpop.f32.mrb[11].mxu0  ;;  %1850 = vtanh.f32 %v194_v61  ;;  %v209_v22 = vadd.f32 %v1732_v44, %v2126_v56  ;;  %v289_v30 = vadd.f32 %v2157_v45, %v2126_v56 }
 0x11f   :  { %v283_v49 = vpop.f32.mrb[11].mxu1  ;;  %v1833_v50 = vpop.eup %1832  ;;  %394 = vadd.xlane.f32.xlu1 %v393_v40  ;;  %v441_v53 = vsel %vm383_vm0, %v370_v42, 0.0  ;;  %v369_v57 = vmul.f32 %v1831_v46, %v2141_v15  ;;  %1852 = vtanh.f32 %v199_v0  ;;  %v204_v20 = vadd.f32 %v2126_v56, %v203_v48 }
 0x120   :  { %v1835_v52 = vpop.eup %1834  ;;  %v353_v60 = vmul.f32 %v1833_v50, %v2141_v15  ;;  %1854 = vtanh.f32 %v274_v9  ;;  %v284_v28 = vadd.f32 %v2126_v56, %v283_v49 }
 0x121   :  { %v1837_v54 = vpop.eup %1836  ;;  %v2164_v58 = vpop.f32.mrb[12].mxu0  ;;  %v355_v1 = vmul.f32 %v1835_v52, %v2141_v15  ;;  %v438_v5 = vsel %vm383_vm0, %v369_v57, 0.0  ;;  %1856 = vtanh.f32 %v279_v13 }
 0x122   :  { %v2166_v59 = vpop.f32.mrb[12].mxu1  ;;  %433 = vadd.xlane.f32.xlu0 %v432_v55  ;;  %v213_v62 = vpop.f32.mrb[13].mxu0  ;;  %v356_v3 = vmul.f32 %v1837_v54, %v2141_v15  ;;  %v390_v8 = vsel %vm383_vm0, %v353_v60, 0.0  ;;  %1858 = vtanh.f32 %v204_v20  ;;  %v219_v38 = vadd.f32 %v2164_v58, %v2126_v56 }
 0x123   :  { %v2170_v63 = vpop.f32.mrb[13].mxu1  ;;  %442 = vadd.xlane.f32.xlu1 %v441_v53  ;;  %v1839_v2 = vpop.eup %1838  ;;  %v396_v12 = vsel %vm383_vm0, %v355_v1, 0.0  ;;  %1860 = vtanh.f32 %v209_v22  ;;  %v214_v36 = vadd.f32 %v2126_v56, %v213_v62  ;;  %v299_v46 = vadd.f32 %v2166_v59, %v2126_v56 }
 0x124   :  { %v1841_v4 = vpop.eup %1840  ;;  %v371_v14 = vmul.f32 %v1839_v2, %v2141_v15  ;;  %v399_v17 = vsel %vm383_vm0, %v356_v3, 0.0  ;;  %1862 = vtanh.f32 %v284_v28  ;;  %v294_v44 = vadd.f32 %v2126_v56, %v2170_v63 }
 0x125   :  { %v2176_v6 = vpop.f32.mrb[14].mxu0  ;;  %v2178_v7 = vpop.f32.mrb[14].mxu1  ;;  %v372_v18 = vmul.f32 %v1841_v4, %v2141_v15  ;;  %1864 = vtanh.f32 %v289_v30 }
 0x126   :  { %439 = vadd.xlane.f32.xlu0 %v438_v5  ;;  %v223_v10 = vpop.f32.mrb[15].mxu0  ;;  %v2182_v11 = vpop.f32.mrb[15].mxu1  ;;  %v444_v21 = vsel %vm383_vm0, %v371_v14, 0.0  ;;  %1866 = vtanh.f32 %v214_v36  ;;  %v229_v54 = vadd.f32 %v2176_v6, %v2126_v56  ;;  %v309_v63 = vadd.f32 %v2178_v7, %v2126_v56 }
 0x127   :  { %391 = vadd.xlane.f32.xlu1 %v390_v8  ;;  %v1843_v16 = vpop.eup %1842  ;;  %v447_v25 = vsel %vm383_vm0, %v372_v18, 0.0  ;;  %1868 = vtanh.f32 %v219_v38  ;;  %v224_v52 = vadd.f32 %v2126_v56, %v223_v10  ;;  %v304_v61 = vadd.f32 %v2126_v56, %v2182_v11 }
 0x128   :  { %v1845_v19 = vpop.eup %1844  ;;  %v357_v23 = vmul.f32 %v1843_v16, %v2141_v15  ;;  %1870 = vtanh.f32 %v294_v44  ;;  %v512_v44 = vlaneseq }
 0x129   :  { %v1847_v24 = vpop.eup %1846  ;;  %v358_v26 = vmul.f32 %v1845_v19, %v2141_v15  ;;  %1872 = vtanh.f32 %v299_v46 }
 0x12a   :  { %397 = vadd.xlane.f32.xlu0 %v396_v12  ;;  %v1849_v27 = vpop.eup %1848  ;;  %v402_v29 = vsel %vm383_vm0, %v357_v23, 0.0  ;;  %v373_v31 = vmul.f32 %v1847_v24, %v2141_v15  ;;  %1874 = vtanh.f32 %v224_v52 }
 0x12b   :  { %400 = vadd.xlane.f32.xlu1 %v399_v17  ;;  %v1851_v32 = vpop.eup %1850  ;;  %v405_v33 = vsel %vm383_vm0, %v358_v26, 0.0  ;;  %v374_v34 = vmul.f32 %v1849_v27, %v2141_v15  ;;  %1876 = vtanh.f32 %v229_v54 }
 0x12c   :  { %v1853_v35 = vpop.eup %1852  ;;  %v450_v37 = vsel %vm383_vm0, %v373_v31, 0.0  ;;  %v359_v39 = vmul.f32 %v1851_v32, %v2141_v15  ;;  %1878 = vtanh.f32 %v304_v61 }
 0x12d   :  { %v1855_v40 = vpop.eup %1854  ;;  %v453_v41 = vsel %vm383_vm0, %v374_v34, 0.0  ;;  %v360_v42 = vmul.f32 %v1853_v35, %v2141_v15  ;;  %1880 = vtanh.f32 %v309_v63 }
 0x12e   :  { %445 = vadd.xlane.f32.xlu0 %v444_v21  ;;  %v1857_v43 = vpop.eup %1856  ;;  %v408_v45 = vsel %vm383_vm0, %v359_v39, 0.0  ;;  %v375_v47 = vmul.f32 %v1855_v40, %v2141_v15 }
 0x12f   :  { %448 = vadd.xlane.f32.xlu1 %v447_v25  ;;  %v1859_v48 = vpop.eup %1858  ;;  %v411_v49 = vsel %vm383_vm0, %v360_v42, 0.0  ;;  %v376_v50 = vmul.f32 %v1857_v43, %v2141_v15 }
 0x130   :  { %v1861_v51 = vpop.eup %1860  ;;  %v456_v53 = vsel %vm383_vm0, %v375_v47, 0.0  ;;  %v361_v55 = vmul.f32 %v1859_v48, %v2141_v15  ;;  %v513_v47 = vand.u32 127, %v512_v44 }
 0x131   :  { %v1863_v57 = vpop.eup %1862  ;;  %v459_v58 = vsel %vm383_vm0, %v376_v50, 0.0  ;;  %v362_v59 = vmul.f32 %v1861_v51, %v2141_v15  ;;  %v2290_v50 = vshrl.u32 %v512_v44, 7 }
 0x132   :  { %403 = vadd.xlane.f32.xlu0 %v402_v29  ;;  %v1865_v60 = vpop.eup %1864  ;;  %v414_v62 = vsel %vm383_vm0, %v361_v55, 0.0  ;;  %v377_v0 = vmul.f32 %v1863_v57, %v2141_v15  ;;  %v518_v51 = vadd.s32 4294967288, %v513_v47 }
 0x133   :  { %406 = vadd.xlane.f32.xlu1 %v405_v33  ;;  %v1867_v1 = vpop.eup %1866  ;;  %v417_v2 = vsel %vm383_vm0, %v362_v59, 0.0  ;;  %v378_v3 = vmul.f32 %v1865_v60, %v2141_v15  ;;  %v2297_v54 = vsub.s32 %v513_v47, %v2290_v50 }
 0x134   :  { %v1869_v4 = vpop.eup %1868  ;;  %v462_v5 = vsel %vm383_vm0, %v377_v0, 0.0  ;;  %v363_v6 = vmul.f32 %v1867_v1, %v2141_v15  ;;  %v2300_v55 = vsub.s32 %v518_v51, %v2290_v50 }
 0x135   :  { %v1871_v8 = vpop.eup %1870  ;;  %v465_v9 = vsel %vm383_vm0, %v378_v3, 0.0  ;;  %v364_v56 = vmul.f32 %v1869_v4, %v2141_v15 }
 0x136   :  { %451 = vadd.xlane.f32.xlu0 %v450_v37  ;;  %v1873_v7 = vpop.eup %1872  ;;  %v420_v10 = vsel %vm383_vm0, %v363_v6, 0.0  ;;  %v379_v11 = vmul.f32 %v1871_v8, %v2141_v15 }
 0x137   :  { %454 = vadd.xlane.f32.xlu1 %v453_v41  ;;  %v1875_v12 = vpop.eup %1874  ;;  %v423_v13 = vsel %vm383_vm0, %v364_v56, 0.0  ;;  %v380_v14 = vmul.f32 %v1873_v7, %v2141_v15 }
 0x138   :  { %v1877_v16 = vpop.eup %1876  ;;  %v468_v17 = vsel %vm383_vm0, %v379_v11, 0.0  ;;  %v365_v18 = vmul.f32 %v1875_v12, %v2141_v15 }
 0x139   :  { %v1879_v19 = vpop.eup %1878  ;;  %v471_v20 = vsel %vm383_vm0, %v380_v14, 0.0  ;;  %v366_v21 = vmul.f32 %v1877_v16, %v2141_v15 }
 0x13a   :  { %409 = vadd.xlane.f32.xlu0 %v408_v45  ;;  %v1881_v22 = vpop.eup %1880  ;;  %v426_v23 = vsel %vm383_vm0, %v365_v18, 0.0  ;;  %v381_v24 = vmul.f32 %v1879_v19, %v2141_v15 }
 0x13b   :  { %412 = vadd.xlane.f32.xlu1 %v411_v49  ;;  %v429_v25 = vsel %vm383_vm0, %v366_v21, 0.0  ;;  %v382_v26 = vmul.f32 %v1881_v22, %v2141_v15 }
 0x13c   :  { %v474_v27 = vsel %vm383_vm0, %v381_v24, 0.0 }
 0x13d   :  { %v477_v28 = vsel %vm383_vm0, %v382_v26, 0.0 }
 0x13e   :  { %457 = vadd.xlane.f32.xlu0 %v456_v53 }
 0x13f   :  { %460 = vadd.xlane.f32.xlu1 %v459_v58 }
 0x142   :  { %415 = vadd.xlane.f32.xlu0 %v414_v62 }
 0x143   :  { %418 = vadd.xlane.f32.xlu1 %v417_v2 }
 0x146   :  { %463 = vadd.xlane.f32.xlu0 %v462_v5 }
 0x147   :  { %466 = vadd.xlane.f32.xlu1 %v465_v9 }
 0x14a   :  { %421 = vadd.xlane.f32.xlu0 %v420_v10 }
 0x14b   :  { %424 = vadd.xlane.f32.xlu1 %v423_v13 }
 0x14e   :  { %469 = vadd.xlane.f32.xlu0 %v468_v17 }
 0x14f   :  { %472 = vadd.xlane.f32.xlu1 %v471_v20 }
 0x152   :  { %427 = vadd.xlane.f32.xlu0 %v426_v23 }
 0x153   :  { %430 = vadd.xlane.f32.xlu1 %v429_v25 }
 0x156   :  { %475 = vadd.xlane.f32.xlu0 %v474_v27 }
 0x157   :  { %478 = vadd.xlane.f32.xlu1 %v477_v28 }
 0x1a7   :  { %v2250_v29 = vpop.xlane.xlu0 %388 }
 0x1a8   :  { %v2252_v30 = vpop.xlane.xlu1 %436  ;;  %v522_v63 = vrot.slane %v2250_v29, %v2300_v55 }
 0x1a9   :  { %v595_v2 = vrot.slane %v2252_v30, %v2300_v55 }
 0x1ab   :  { %v2254_v31 = vpop.xlane.xlu0 %385 }
 0x1ac   :  { %v2256_v32 = vpop.xlane.xlu1 %394  ;;  %v517_v59 = vrot.slane %v2254_v31, %v2297_v54 }
 0x1ad   :  { %v532_v0 = vrot.slane %v2256_v32, %v2300_v55 }
 0x1ae   :  { %v524_v6 = vsel %vm523_vm1, %v522_v63, %v517_v59 }
 0x1af   :  { %v2258_v33 = vpop.xlane.xlu0 %433 }
 0x1b0   :  { %v2260_v34 = vpop.xlane.xlu1 %442  ;;  %v591_v14 = vrot.slane %v2258_v33, %v2297_v54 }
 0x1b1   :  { %v604_v13 = vrot.slane %v2260_v34, %v2300_v55 }
 0x1b3   :  { %v2262_v15 = vpop.xlane.xlu0 %439 }
 0x1b4   :  { %v2264_v35 = vpop.xlane.xlu1 %391  ;;  %v600_v9 = vrot.slane %v2262_v15, %v2297_v54 }
 0x1b5   :  { %v528_v60 = vrot.slane %v2264_v35, %v2297_v54 }
 0x1b6   :  { %v605_v24 = vsel %vm523_vm1, %v604_v13, %v600_v9  ;;  %v596_v9 = vsel %vm523_vm1, %v595_v2, %v591_v14 }
 0x1b7   :  { %v2266_v36 = vpop.xlane.xlu0 %397  ;;  %v533_v8 = vsel %vm523_vm1, %v532_v0, %v528_v60 }
 0x1b8   :  { %v2268_v37 = vpop.xlane.xlu1 %400  ;;  %v537_v62 = vrot.slane %v2266_v36, %v2297_v54  ;;  %v661_v19 = vsel %vm660_vm2, %v533_v8, %v524_v6 }
 0x1b9   :  { %v541_v61 = vrot.slane %v2268_v37, %v2300_v55 }
 0x1bb   :  { %v2270_v38 = vpop.xlane.xlu0 %445  ;;  %v542_v56 = vsel %vm523_vm1, %v541_v61, %v537_v62 }
 0x1bc   :  { %v2272_v39 = vpop.xlane.xlu1 %448  ;;  %v609_v10 = vrot.slane %v2270_v38, %v2297_v54  ;;  %v663_v25 = vsel %vm662_vm3, %v542_v56, %v661_v19 }
 0x1bd   :  { %v613_v7 = vrot.slane %v2272_v39, %v2300_v55 }
 0x1bf   :  { %v2274_v40 = vpop.xlane.xlu0 %403  ;;  %v614_v28 = vsel %vm523_vm1, %v613_v7, %v609_v10 }
 0x1c0   :  { %v2276_v41 = vpop.xlane.xlu1 %406  ;;  %v546_v4 = vrot.slane %v2274_v40, %v2297_v54 }
 0x1c1   :  { %v550_v3 = vrot.slane %v2276_v41, %v2300_v55 }
 0x1c3   :  { %v2278_v42 = vpop.xlane.xlu0 %451  ;;  %v551_v20 = vsel %vm523_vm1, %v550_v3, %v546_v4 }
 0x1c4   :  { %v2280_v43 = vpop.xlane.xlu1 %454  ;;  %v618_v27 = vrot.slane %v2278_v42, %v2297_v54  ;;  %v665_v59 = vsel %vm664_vm4, %v551_v20, %v663_v25 }
 0x1c5   :  { %v622_v26 = vrot.slane %v2280_v43, %v2300_v55 }
 0x1c7   :  { %v2282_v45 = vpop.xlane.xlu0 %409  ;;  %v623_v56 = vsel %vm523_vm1, %v622_v26, %v618_v27 }
 0x1c8   :  { %v2284_v46 = vpop.xlane.xlu1 %412  ;;  %v555_v12 = vrot.slane %v2282_v45, %v2297_v54 }
 0x1c9   :  { %v559_v11 = vrot.slane %v2284_v46, %v2300_v55 }
 0x1cb   :  { %v2286_v48 = vpop.xlane.xlu0 %457  ;;  %v560_v44 = vsel %vm523_vm1, %v559_v11, %v555_v12  ;;  %v674_v11 = vsel %vm660_vm2, %v605_v24, %v596_v9 }
 0x1cc   :  { %v2288_v49 = vpop.xlane.xlu1 %460  ;;  %v627_v51 = vrot.slane %v2286_v48, %v2297_v54  ;;  %v667_v10 = vsel %vm666_vm5, %v560_v44, %v665_v59 }
 0x1cd   :  { %v631_v47 = vrot.slane %v2288_v49, %v2300_v55 }
 0x1cf   :  { %v2292_v52 = vpop.xlane.xlu0 %415  ;;  %v632_v12 = vsel %vm523_vm1, %v631_v47, %v627_v51 }
 0x1d0   :  { %v2294_v53 = vpop.xlane.xlu1 %418  ;;  %v564_v17 = vrot.slane %v2292_v52, %v2297_v54 }
 0x1d1   :  { %v568_v16 = vrot.slane %v2294_v53, %v2300_v55 }
 0x1d3   :  { %v2302_v57 = vpop.xlane.xlu0 %463  ;;  %v569_v60 = vsel %vm523_vm1, %v568_v16, %v564_v17  ;;  %v675_v16 = vsel %vm662_vm3, %v614_v28, %v674_v11 }
 0x1d4   :  { %v2304_v58 = vpop.xlane.xlu1 %466  ;;  %v636_v62 = vrot.slane %v2302_v57, %v2297_v54  ;;  %v669_v13 = vsel %vm668_vm6, %v569_v60, %v667_v10  ;;  %v676_v20 = vsel %vm664_vm4, %v623_v56, %v675_v16  ;;  %v2436_v10 = vsub.s32 2, %v2290_v50 }
 0x1d5   :  { %v640_v61 = vrot.slane %v2304_v58, %v2300_v55  ;;  %v677_v28 = vsel %vm666_vm5, %v632_v12, %v676_v20  ;;  %v2448_v20 = vsub.s32 3, %v2290_v50 }
 0x1d7   :  { %v2318_v1 = vpop.xlane.xlu0 %421  ;;  %v641_v17 = vsel %vm523_vm1, %v640_v61, %v636_v62  ;;  %v2033_v61 = vmov 0   ;;  %v2419_v62 = vsub.s32 0, %v2290_v50 }
 0x1d8   :  { %v2326_v5 = vpop.xlane.xlu1 %424  ;;  %v573_v22 = vrot.slane %v2318_v1, %v2297_v54  ;;  %v678_v44 = vsel %vm668_vm6, %v641_v17, %v677_v28  ;;  %1817 = vset.pattern.permute.xlu1 %v2033_v61  ;;  %1816 = vset.pattern.permute.xlu0 %v2033_v61 }
 0x1d9   :  { %v577_v21 = vrot.slane %v2326_v5, %v2300_v55 }
 0x1db   :  { %v2349_v18 = vpop.xlane.xlu0 %469  ;;  %v578_v8 = vsel %vm523_vm1, %v577_v21, %v573_v22 }
 0x1dc   :  { %v2357_v23 = vpop.xlane.xlu1 %472  ;;  %v645_v3 = vrot.slane %v2349_v18, %v2297_v54  ;;  %v671_v14 = vsel %vm670_vm7, %v578_v8, %v669_v13  ;;  %v2429_v8 = vsub.s32 4, %v2290_v50 }
 0x1dd   :  { %v649_v0 = vrot.slane %v2357_v23, %v2300_v55 }
 0x1df   :  { %v2377_v63 = vpop.xlane.xlu0 %427  ;;  %v650_v25 = vsel %vm523_vm1, %v649_v0, %v645_v3  ;;  %v2422_v0 = vsub.s32 1, %v2290_v50 }
 0x1e0   :  { %v2383_v4 = vpop.xlane.xlu1 %430  ;;  %v582_v6 = vrot.slane %v2377_v63, %v2297_v54  ;;  %v679_v51 = vsel %vm670_vm7, %v650_v25, %v678_v44 }
 0x1e1   :  { %v586_v7 = vrot.slane %v2383_v4, %v2300_v55 }
 0x1e3   :  { %v2398_v19 = vpop.xlane.xlu0 %475  ;;  %v587_v2 = vsel %vm523_vm1, %v586_v7, %v582_v6 }
 0x1e4   :  { %v2403_v21 = vpop.xlane.xlu1 %478  ;;  %v654_v22 = vrot.slane %v2398_v19, %v2297_v54  ;;  %v673_v24 = vsel %vm672_vm8, %v587_v2, %v671_v14 }
 0x1e5   :  { %v658_v26 = vrot.slane %v2403_v21, %v2300_v55  ;;  %v684_v27 = vsel %vm683_vm9, %v673_v24, -inf }
 0x1e6   :  { %685 = vmax.xlane.f32.xlu0 %v684_v27 }
 0x1e7   :  { %v659_v47 = vsel %vm523_vm1, %v658_v26, %v654_v22 }
 0x1e8   :  { %v680_v59 = vsel %vm672_vm8, %v659_v47, %v679_v51 }
 0x1e9   :  { %v687_v60 = vsel %vm683_vm9, %v680_v59, -inf }
 0x1ea   :  { %688 = vmax.xlane.f32.xlu1 %v687_v60 }
 0x273   :  { %v2424_v3 = vpop.xlane.xlu0 %685 }
 0x274   :  { %v695_v6 = vrot.slane %v2424_v3, %v2419_v62  ;;  %v699_v9 = vrot.slane %v2424_v3, %v2422_v0  ;;  %v711_v11 = vrot.slane %v2424_v3, %v2429_v8  ;;  %v703_v2 = vrot.slane %v2424_v3, %v2436_v10 }
 0x275   :  { %v707_v25 = vrot.slane %v2424_v3, %v2448_v20 }
 0x276   :  { %v772_v56 = vsub.f32 %v2254_v31, %v695_v6  ;;  %v773_v7 = vsub.f32 %v2250_v29, %v695_v6  ;;  %v774_v12 = vsub.f32 %v2264_v35, %v699_v9  ;;  %v775_v17 = vsub.f32 %v2256_v32, %v699_v9 }
 0x277   :  { %v781_v31 = vsub.f32 %v2284_v46, %v711_v11  ;;  %v2445_v14 = vpop.xlane.xlu1 %688  ;;  %v776_v35 = vsub.f32 %v2266_v36, %v703_v2  ;;  %v777_v46 = vsub.f32 %v2268_v37, %v703_v2  ;;  %v778_v47 = vsub.f32 %v2274_v40, %v707_v25 }
 0x278   :  { %v804_v13 = vmul.f32 1.442695, %v772_v56  ;;  %v806_v16 = vmul.f32 1.442695, %v773_v7  ;;  %v808_v29 = vmul.f32 1.442695, %v774_v12  ;;  %v727_v32 = vrot.slane %v2445_v14, %v2419_v62 }
 0x279   :  { %v810_v22 = vmul.f32 1.442695, %v775_v17  ;;  %v822_v24 = vmul.f32 1.442695, %v781_v31  ;;  %v812_v26 = vmul.f32 1.442695, %v776_v35  ;;  %v2458_v27 = vrot.slane %v2445_v14, %v2422_v0 }
 0x27a   :  { %1882 = vpow2.f32 %v804_v13  ;;  %v789_v28 = vsub.f32 %v2252_v30, %v727_v32  ;;  %v814_v51 = vmul.f32 1.442695, %v777_v46  ;;  %v735_v37 = vrot.slane %v2445_v14, %v2436_v10 }
 0x27b   :  { %1884 = vpow2.f32 %v806_v16  ;;  %v791_v59 = vsub.f32 %v2260_v34, %v2458_v27  ;;  %v779_v61 = vsub.f32 %v2276_v41, %v707_v25  ;;  %v816_v6 = vmul.f32 1.442695, %v778_v47 }
 0x27c   :  { %1886 = vpow2.f32 %v808_v29  ;;  %v838_v60 = vmul.f32 1.442695, %v789_v28  ;;  %v2478_v40 = vrot.slane %v2445_v14, %v2448_v20  ;;  %v793_v9 = vsub.f32 %v2272_v39, %v735_v37 }
 0x27d   :  { %1888 = vpow2.f32 %v810_v22  ;;  %v842_v56 = vmul.f32 1.442695, %v791_v59  ;;  %v2486_v12 = vsub.s32 5, %v2290_v50  ;;  %v780_v41 = vsub.f32 %v2282_v45, %v711_v11 }
 0x27e   :  { %1890 = vpow2.f32 %v822_v24  ;;  %v818_v13 = vmul.f32 1.442695, %v779_v61  ;;  %v2493_v39 = vrot.slane %v2445_v14, %v2429_v8  ;;  %v795_v16 = vsub.f32 %v2280_v43, %v2478_v40 }
 0x27f   :  { %1892 = vpow2.f32 %v812_v26  ;;  %2803 = vst [vmem:[#allocation8_spill] sm:$0xff] %v2486_v12  ;;  %v846_v17 = vmul.f32 1.442695, %v793_v9  ;;  %v2501_v45 = vrot.slane %v2424_v3, %v2486_v12  ;;  %v820_v11 = vmul.f32 1.442695, %v780_v41 }
 0x280   :  { %1894 = vpow2.f32 %v814_v51  ;;  %v788_v31 = vsub.f32 %v2258_v33, %v727_v32  ;;  %v797_v29 = vsub.f32 %v2288_v49, %v2493_v39  ;;  %v850_v22 = vmul.f32 1.442695, %v795_v16 }
 0x281   :  { %1896 = vpow2.f32 %v838_v60  ;;  %v2512_v24 = vsub.s32 6, %v2290_v50  ;;  %v783_v25 = vsub.f32 %v2294_v53, %v2501_v45  ;;  %v747_v33 = vrot.slane %v2445_v14, %v2486_v12 }
 0x282   :  { %1898 = vpow2.f32 %v816_v6  ;;  %v836_v46 = vmul.f32 1.442695, %v788_v31  ;;  %v790_v49 = vsub.f32 %v2262_v15, %v2458_v27  ;;  %v854_v32 = vmul.f32 1.442695, %v797_v29 }
 0x283   :  { %1900 = vpow2.f32 %v842_v56  ;;  %2804 = vst [vmem:[#allocation9_spill] sm:$0xff] %v2512_v24  ;;  %v2528_v53 = vrot.slane %v2424_v3, %v2512_v24  ;;  %v826_v47 = vmul.f32 1.442695, %v783_v25  ;;  %v792_v51 = vsub.f32 %v2270_v38, %v735_v37 }
 0x284   :  { %v2461_v36 = vpop.eup %1882  ;;  %1902 = vpow2.f32 %v818_v13  ;;  %v799_v15 = vsub.f32 %v2304_v58, %v747_v33  ;;  %v840_v27 = vmul.f32 1.442695, %v790_v49  ;;  %v2539_v61 = vsub.s32 7, %v2290_v50 }
 0x285   :  { %v2463_v44 = vpop.eup %1884  ;;  %901 = vperm.xlu0 %1816, %v2461_v36   ;;  %1904 = vpow2.f32 %v846_v17  ;;  %v785_v6 = vsub.f32 %v2326_v5, %v2528_v53  ;;  %v844_v38 = vmul.f32 1.442695, %v792_v51  ;;  %v751_v58 = vrot.slane %v2445_v14, %v2512_v24 }
 0x286   :  { %904 = vperm.xlu1 %1817, %v2463_v44   ;;  %v2472_v30 = vpop.eup %1886  ;;  %1906 = vpow2.f32 %v820_v11  ;;  %2805 = vst [vmem:[#allocation10_spill] sm:$0xff] %v2539_v61  ;;  %v794_v37 = vsub.f32 %v2278_v42, %v2478_v40  ;;  %v858_v9 = vmul.f32 1.442695, %v799_v15  ;;  %v796_v5 = vsub.f32 %v2286_v48, %v2493_v39 }
 0x287   :  { %v2481_v7 = vpop.eup %1888  ;;  %1908 = vpow2.f32 %v850_v22  ;;  %v830_v41 = vmul.f32 1.442695, %v785_v6  ;;  %v723_v13 = vrot.slane %v2424_v3, %v2539_v61  ;;  %v801_v42 = vsub.f32 %v2357_v23, %v751_v58 }
 0x288   :  { %v2483_v34 = vpop.eup %1890  ;;  %1910 = vpow2.f32 %v836_v46  ;;  %v848_v40 = vmul.f32 1.442695, %v794_v37  ;;  %v782_v11 = vsub.f32 %v2292_v52, %v2501_v45  ;;  %v852_v48 = vmul.f32 1.442695, %v796_v5 }
 0x289   :  { %928 = vperm.xlu0 %1816, %v2483_v34   ;;  %v2497_v2 = vpop.eup %1892  ;;  %1912 = vpow2.f32 %v854_v32  ;;  %v787_v39 = vsub.f32 %v2383_v4, %v723_v13  ;;  %v755_v23 = vrot.slane %v2445_v14, %v2539_v61  ;;  %v862_v3 = vmul.f32 1.442695, %v801_v42 }
 0x28a   :  { %907 = vperm.xlu1 %1817, %v2472_v30   ;;  %v2507_v43 = vpop.eup %1894  ;;  %1914 = vpow2.f32 %v826_v47  ;;  %v824_v22 = vmul.f32 1.442695, %v782_v11  ;;  %v798_v52 = vsub.f32 %v2302_v57, %v747_v33  ;;  %v784_v57 = vsub.f32 %v2318_v1, %v2528_v53 }
 0x28b   :  { %v2509_v35 = vpop.eup %1896  ;;  %1916 = vpow2.f32 %v840_v27  ;;  %v834_v45 = vmul.f32 1.442695, %v787_v39  ;;  %v803_v4 = vsub.f32 %v2403_v21, %v755_v23  ;;  %v800_v47 = vsub.f32 %v2349_v18, %v751_v58 }
 0x28c   :  { %v2522_v26 = vpop.eup %1898  ;;  %1918 = vpow2.f32 %v844_v38  ;;  %v856_v46 = vmul.f32 1.442695, %v798_v52  ;;  %v828_v21 = vmul.f32 1.442695, %v784_v57  ;;  %v786_v1 = vsub.f32 %v2377_v63, %v723_v13 }
 0x28d   :  { %952 = vperm.xlu0 %1816, %v2509_v35   ;;  %v2524_v28 = vpop.eup %1900  ;;  %1920 = vpow2.f32 %v858_v9  ;;  %v866_v33 = vmul.f32 1.442695, %v803_v4  ;;  %v860_v53 = vmul.f32 1.442695, %v800_v47  ;;  %v802_v38 = vsub.f32 %v2398_v19, %v755_v23 }
 0x28e   :  { %910 = vperm.xlu1 %1817, %v2481_v7   ;;  %v2534_v59 = vpop.eup %1902  ;;  %1922 = vpow2.f32 %v830_v41  ;;  %v832_v18 = vmul.f32 1.442695, %v786_v1 }
 0x28f   :  { %v2536_v60 = vpop.eup %1904  ;;  %1924 = vpow2.f32 %v848_v40  ;;  %v864_v63 = vmul.f32 1.442695, %v802_v38 }
 0x290   :  { %v2549_v56 = vpop.eup %1906  ;;  %1926 = vpow2.f32 %v852_v48 }
 0x291   :  { %958 = vperm.xlu0 %1816, %v2524_v28   ;;  %v2551_v50 = vpop.eup %1908  ;;  %1928 = vpow2.f32 %v862_v3 }
 0x292   :  { %913 = vperm.xlu1 %1817, %v2497_v2   ;;  %v2560_v16 = vpop.eup %1910  ;;  %1930 = vpow2.f32 %v824_v22 }
 0x293   :  { %v2562_v17 = vpop.eup %1912  ;;  %1932 = vpow2.f32 %v834_v45 }
 0x294   :  { %v2571_v31 = vpop.eup %1914  ;;  %1934 = vpow2.f32 %v856_v46 }
 0x295   :  { %964 = vperm.xlu0 %1816, %v2536_v60   ;;  %2806 = vst [vmem:[#allocation11_spill] sm:$0xff] %v2571_v31  ;;  %v2573_v29 = vpop.eup %1916  ;;  %1936 = vpow2.f32 %v866_v33 }
 0x296   :  { %916 = vperm.xlu1 %1817, %v2507_v43   ;;  %v2579_v25 = vpop.eup %1918  ;;  %1938 = vpow2.f32 %v828_v21 }
 0x297   :  { %v2581_v14 = vpop.eup %1920  ;;  %1940 = vpow2.f32 %v860_v53 }
 0x298   :  { %2807 = vst [vmem:[#allocation12_spill] sm:$0xff] %v2581_v14  ;;  %v2587_v49 = vpop.eup %1922  ;;  %1942 = vpow2.f32 %v832_v18 }
 0x299   :  { %970 = vperm.xlu0 %1816, %v2551_v50   ;;  %2808 = vst [vmem:[#allocation13_spill] sm:$0xff] %v2587_v49  ;;  %v2589_v32 = vpop.eup %1924  ;;  %1944 = vpow2.f32 %v864_v63 }
 0x29a   :  { %919 = vperm.xlu1 %1817, %v2522_v26   ;;  %v2594_v51 = vpop.eup %1926 }
 0x29b   :  { %v2596_v15 = vpop.eup %1928 }
 0x29c   :  { %2809 = vst [vmem:[#allocation14_spill] sm:$0xff] %v2596_v15  ;;  %v2601_v27 = vpop.eup %1930 }
 0x29d   :  { %976 = vperm.xlu0 %1816, %v2562_v17   ;;  %2810 = vst [vmem:[#allocation15_spill] sm:$0xff] %v2601_v27  ;;  %v2603_v6 = vpop.eup %1932 }
 0x29e   :  { %922 = vperm.xlu1 %1817, %v2534_v59   ;;  %2811 = vst [vmem:[#allocation16_spill] sm:$0xff] %v2603_v6  ;;  %v2608_v58 = vpop.eup %1934 }
 0x29f   :  { %2812 = vst [vmem:[#allocation17_spill] sm:$0xff] %v2608_v58  ;;  %v2610_v37 = vpop.eup %1936 }
 0x2a0   :  { %2813 = vst [vmem:[#allocation18_spill] sm:$0xff] %v2610_v37  ;;  %v2614_v9 = vpop.eup %1938 }
 0x2a1   :  { %934 = vperm.xlu0 %1816, %v2571_v31   ;;  %2814 = vst [vmem:[#allocation19_spill] sm:$0xff] %v2614_v9  ;;  %v2617_v41 = vpop.eup %1940 }
 0x2a2   :  { %925 = vperm.xlu1 %1817, %v2549_v56   ;;  %2815 = vst [vmem:[#allocation20_spill] sm:$0xff] %v2617_v41  ;;  %v2620_v19 = vpop.eup %1942 }
 0x2a3   :  { %2816 = vst [vmem:[#allocation21_spill] sm:$0xff] %v2620_v19  ;;  %v2623_v5 = vpop.eup %1944 }
 0x2a4   :  { %2817 = vst [vmem:[#allocation22_spill] sm:$0xff] %v2623_v5 }
 0x2a5   :  { %982 = vperm.xlu0 %1816, %v2581_v14  }
 0x2a6   :  { %949 = vperm.xlu1 %1817, %v2560_v16  }
 0x2a9   :  { %940 = vperm.xlu0 %1816, %v2587_v49  }
 0x2aa   :  { %955 = vperm.xlu1 %1817, %v2573_v29  }
 0x2ad   :  { %988 = vperm.xlu0 %1816, %v2596_v15  }
 0x2ae   :  { %961 = vperm.xlu1 %1817, %v2579_v25  }
 0x2b1   :  { %946 = vperm.xlu0 %1816, %v2603_v6  }
 0x2b2   :  { %967 = vperm.xlu1 %1817, %v2589_v32  }
 0x2b5   :  { %994 = vperm.xlu0 %1816, %v2610_v37  }
 0x2b6   :  { %973 = vperm.xlu1 %1817, %v2594_v51  }
 0x2ba   :  { %931 = vperm.xlu1 %1817, %v2601_v27  }
 0x2be   :  { %979 = vperm.xlu1 %1817, %v2608_v58  }
 0x2c2   :  { %937 = vperm.xlu1 %1817, %v2614_v9  }
 0x2c6   :  { %985 = vperm.xlu1 %1817, %v2617_v41  }
 0x2ca   :  { %943 = vperm.xlu1 %1817, %v2620_v19  }
 0x2ce   :  { %991 = vperm.xlu1 %1817, %v2623_v5  }
 0x304   :  { %v902_v42 = vpop.permute.xlu0 %901 }
 0x305   :  { %v905_v13 = vpop.permute.xlu1 %904  ;;  %v999_v15 = vrot.slane %v902_v42, %v2297_v54 }
 0x306   :  { %v1003_v41 = vrot.slane %v905_v13, %v2300_v55 }
 0x308   :  { %v929_v48 = vpop.permute.xlu0 %928  ;;  %v1004_v13 = vsel %vm523_vm1, %v1003_v41, %v999_v15 }
 0x309   :  { %v908_v40 = vpop.permute.xlu1 %907  ;;  %v1039_v42 = vrot.slane %v929_v48, %v2300_v55 }
 0x30a   :  { %v1008_v9 = vrot.slane %v908_v40, %v2297_v54 }
 0x30c   :  { %v953_v23 = vpop.permute.xlu0 %952 }
 0x30d   :  { %v911_v11 = vpop.permute.xlu1 %910 }
 0x30e   :  { %v1012_v19 = vrot.slane %v911_v11, %v2300_v55 }
 0x310   :  { %v959_v22 = vpop.permute.xlu0 %958  ;;  %v1013_v14 = vsel %vm523_vm1, %v1012_v19, %v1008_v9 }
 0x311   :  { %v914_v39 = vpop.permute.xlu1 %913  ;;  %v1140_v40 = vsel %vm660_vm2, %v1013_v14, %v1004_v13 }
 0x312   :  { %v1017_v49 = vrot.slane %v914_v39, %v2297_v54  ;;  %v1075_v39 = vrot.slane %v953_v23, %v2300_v55 }
 0x314   :  { %v965_v45 = vpop.permute.xlu0 %964 }
 0x315   :  { %v917_v3 = vpop.permute.xlu1 %916 }
 0x316   :  { %v1021_v6 = vrot.slane %v917_v3, %v2300_v55 }
 0x318   :  { %v971_v46 = vpop.permute.xlu0 %970  ;;  %v1022_v11 = vsel %vm523_vm1, %v1021_v6, %v1017_v49  ;;  %v1084_v6 = vrot.slane %v959_v22, %v2300_v55 }
 0x319   :  { %v920_v52 = vpop.permute.xlu1 %919  ;;  %v1141_v12 = vsel %vm662_vm3, %v1022_v11, %v1140_v40 }
 0x31a   :  { %v1026_v3 = vrot.slane %v920_v52, %v2297_v54 }
 0x31c   :  { %v2626_v21 = vpop.permute.xlu0 %976 }
 0x31d   :  { %v923_v4 = vpop.permute.xlu1 %922 }
 0x31e   :  { %v1030_v24 = vrot.slane %v923_v4, %v2300_v55 }
 0x320   :  { %v935_v1 = vpop.permute.xlu0 %934  ;;  %v1031_v4 = vsel %vm523_vm1, %v1030_v24, %v1026_v3  ;;  %v1093_v24 = vrot.slane %v965_v45, %v2300_v55 }
 0x321   :  { %v926_v57 = vpop.permute.xlu1 %925  ;;  %v1142_v52 = vsel %vm664_vm4, %v1031_v4, %v1141_v12 }
 0x322   :  { %v1035_v27 = vrot.slane %v926_v57, %v2297_v54 }
 0x324   :  { %v983_v38 = vpop.permute.xlu0 %982  ;;  %v1040_v9 = vsel %vm523_vm1, %v1039_v42, %v1035_v27  ;;  %v1048_v27 = vrot.slane %v935_v1, %v2300_v55 }
 0x325   :  { %v950_v33 = vpop.permute.xlu1 %949  ;;  %v1143_v22 = vsel %vm666_vm5, %v1040_v9, %v1142_v52 }
 0x326   :  { %v1071_v15 = vrot.slane %v950_v33, %v2297_v54 }
 0x328   :  { %v941_v5 = vpop.permute.xlu0 %940  ;;  %v1076_v1 = vsel %vm523_vm1, %v1075_v39, %v1071_v15 }
 0x329   :  { %v956_v47 = vpop.permute.xlu1 %955  ;;  %v1057_v33 = vrot.slane %v941_v5, %v2300_v55 }
 0x32a   :  { %v1080_v19 = vrot.slane %v956_v47, %v2297_v54 }
 0x32c   :  { %v989_v58 = vpop.permute.xlu0 %988 }
 0x32d   :  { %v962_v53 = vpop.permute.xlu1 %961 }
 0x32e   :  { %v1089_v41 = vrot.slane %v962_v53, %v2297_v54  ;;  %v1085_v53 = vsel %vm523_vm1, %v1084_v6, %v1080_v19 }
 0x32f   :  { %v1147_v42 = vsel %vm660_vm2, %v1085_v53, %v1076_v1 }
 0x330   :  { %v947_v48 = vpop.permute.xlu0 %946 }
 0x331   :  { %v968_v18 = vpop.permute.xlu1 %967 }
 0x332   :  { %v1098_v57 = vrot.slane %v968_v18, %v2297_v54  ;;  %v1094_v18 = vsel %vm523_vm1, %v1093_v24, %v1089_v41 }
 0x333   :  { %v1148_v9 = vsel %vm662_vm3, %v1094_v18, %v1147_v42  ;;  %v2818_v42 = vld [vmem:[#allocation8_spill] sm:$0xff] }
 0x334   :  { %v995_v39 = vpop.permute.xlu0 %994 }
 0x335   :  { %v974_v63 = vpop.permute.xlu1 %973 }
 0x336   :  { %v1107_v47 = vrot.slane %v974_v63, %v2297_v54  ;;  %v1120_v63 = vrot.slane %v983_v38, %v2300_v55 }
 0x339   :  { %v932_v37 = vpop.permute.xlu1 %931 }
 0x33a   :  { %v1044_v49 = vrot.slane %v932_v37, %v2297_v54  ;;  %v1102_v37 = vrot.slane %v971_v46, %v2300_v55 }
 0x33c   :  { %v1049_v45 = vsel %vm523_vm1, %v1048_v27, %v1044_v49  ;;  %v1103_v3 = vsel %vm523_vm1, %v1102_v37, %v1098_v57 }
 0x33d   :  { %v980_v61 = vpop.permute.xlu1 %979  ;;  %v1144_v4 = vsel %vm668_vm6, %v1049_v45, %v1143_v22  ;;  %v1149_v6 = vsel %vm664_vm4, %v1103_v3, %v1148_v9  ;;  %v2824_v9 = vld [vmem:[#allocation13_spill] sm:$0xff] }
 0x33e   :  { %v1116_v12 = vrot.slane %v980_v61, %v2297_v54  ;;  %v1129_v61 = vrot.slane %v989_v58, %v2300_v55 }
 0x340   :  { %v1121_v19 = vsel %vm523_vm1, %v1120_v63, %v1116_v12 }
 0x341   :  { %v938_v31 = vpop.permute.xlu1 %937 }
 0x342   :  { %v1053_v14 = vrot.slane %v938_v31, %v2297_v54  ;;  %v1111_v31 = vrot.slane %v2626_v21, %v2300_v55  ;;  %v1066_v21 = vrot.slane %v947_v48, %v2300_v55 }
 0x344   :  { %v1058_v46 = vsel %vm523_vm1, %v1057_v33, %v1053_v14  ;;  %v1112_v40 = vsel %vm523_vm1, %v1111_v31, %v1107_v47  ;;  %v1138_v14 = vrot.slane %v995_v39, %v2300_v55  ;;  %v2822_v39 = vld [vmem:[#allocation17_spill] sm:$0xff] }
 0x345   :  { %v986_v23 = vpop.permute.xlu1 %985  ;;  %v1145_v49 = vsel %vm670_vm7, %v1058_v46, %v1144_v4  ;;  %v1150_v48 = vsel %vm666_vm5, %v1112_v40, %v1149_v6 }
 0x346   :  { %v1125_v11 = vrot.slane %v986_v23, %v2297_v54  ;;  %v1151_v52 = vsel %vm668_vm6, %v1121_v19, %v1150_v48 }
 0x348   :  { %v1130_v15 = vsel %vm523_vm1, %v1129_v61, %v1125_v11  ;;  %v2820_v61 = vld [vmem:[#allocation15_spill] sm:$0xff] }
 0x349   :  { %v944_v5 = vpop.permute.xlu1 %943  ;;  %v1152_v57 = vsel %vm670_vm7, %v1130_v15, %v1151_v52  ;;  %v2826_v15 = vld [vmem:[#allocation14_spill] sm:$0xff] }
 0x34a   :  { %v1062_v13 = vrot.slane %v944_v5, %v2297_v54 }
 0x34c   :  { %v1067_v38 = vsel %vm523_vm1, %v1066_v21, %v1062_v13 }
 0x34d   :  { %v992_v41 = vpop.permute.xlu1 %991  ;;  %v1146_v58 = vsel %vm672_vm8, %v1067_v38, %v1145_v49  ;;  %v2825_v38 = vld [vmem:[#allocation19_spill] sm:$0xff] }
 0x34e   :  { %v1134_v23 = vrot.slane %v992_v41, %v2297_v54  ;;  %v1156_v24 = vsel %vm683_vm9, %v1146_v58, 0.0  ;;  %v2827_v58 = vld [vmem:[#allocation20_spill] sm:$0xff] }
 0x34f   :  { %1157 = vadd.xlane.f32.xlu1 %v1156_v24  ;;  %v2829_v24 = vld [vmem:[#allocation16_spill] sm:$0xff] }
 0x350   :  { %v1139_v27 = vsel %vm523_vm1, %v1138_v14, %v1134_v23  ;;  %v2828_v14 = vld [vmem:[#allocation10_spill] sm:$0xff] }
 0x351   :  { %v1153_v37 = vsel %vm672_vm8, %v1139_v27, %v1152_v57  ;;  %v2830_v27 = vld [vmem:[#allocation21_spill] sm:$0xff] }
 0x352   :  { %v1159_v22 = vsel %vm683_vm9, %v1153_v37, 0.0 }
 0x353   :  { %1160 = vadd.xlane.f32.xlu0 %v1159_v22  ;;  %v2831_v22 = vld [vmem:[#allocation18_spill] sm:$0xff] }
 0x3dc   :  { %v1158_v33 = vpop.xlane.xlu1 %1157 }
 0x3dd   :  { %1946 = vrcp.f32 %v1158_v33 }
 0x3e0   :  { %v1161_v55 = vpop.xlane.xlu0 %1160 }
 0x3e1   :  { %1948 = vrcp.f32 %v1161_v55 }
 0x3e7   :  { %v2693_v47 = vpop.eup %1946 }
 0x3e8   :  { %v1169_v54 = vrot.slane %v2693_v47, %v2419_v62  ;;  %v1173_v45 = vrot.slane %v2693_v47, %v2422_v0  ;;  %v1177_v18 = vrot.slane %v2693_v47, %v2436_v10  ;;  %v1197_v23 = vrot.slane %v2693_v47, %v2828_v14 }
 0x3ea   :  { %v1247_v31 = vmul.f32 %v2463_v44, %v1169_v54  ;;  %v1246_v53 = vmul.f32 %v2461_v36, %v1169_v54  ;;  %v1248_v12 = vmul.f32 %v2472_v30, %v1173_v45  ;;  %v1249_v1 = vmul.f32 %v2481_v7, %v1173_v45  ;;  %v2832_v54 = vld [vmem:[#allocation22_spill] sm:$0xff] }
 0x3eb   :  { %v1250_v46 = vmul.f32 %v2497_v2, %v1177_v18  ;;  %v1251_v44 = vmul.f32 %v2507_v43, %v1177_v18  ;;  %v1181_v36 = vrot.slane %v2693_v47, %v2448_v20  ;;  %v1185_v7 = vrot.slane %v2693_v47, %v2429_v8  ;;  %v1949_v5 = vpop.eup %1948 }
 0x3ec   :  { %1285 = vperm.xlu1 %1817, %v1247_v31   ;;  %1280 = vperm.xlu0 %1816, %v1246_v53   ;;  %v1201_v43 = vrot.slane %v1949_v5, %v2419_v62  ;;  %v1261_v52 = vmul.f32 %v2829_v24, %v1197_v23  ;;  %v1260_v57 = vmul.f32 %v2830_v27, %v1197_v23  ;;  %v1963_v24 = vld [vmem:[#allocation2 + $0x98] sm:$0xff]  ;;  %v1964_v27 = vld [vmem:[#allocation2 + $0xa0] sm:$0xff] }
 0x3ed   :  { %v1252_v11 = vmul.f32 %v2522_v26, %v1181_v36  ;;  %v1253_v30 = vmul.f32 %v2534_v59, %v1181_v36  ;;  %v1254_v63 = vmul.f32 %v2549_v56, %v1185_v7  ;;  %v1255_v2 = vmul.f32 %v2483_v34, %v1185_v7  ;;  %v1950_v7 = vld [vmem:[#allocation2 + $0x8] sm:$0xff] }
 0x3ee   :  { %v1263_v3 = vmul.f32 %v2509_v35, %v1201_v43  ;;  %v1262_v26 = vmul.f32 %v2560_v16, %v1201_v43  ;;  %v1205_v59 = vrot.slane %v1949_v5, %v2422_v0  ;;  %v1209_v56 = vrot.slane %v1949_v5, %v2436_v10  ;;  %v1952_v43 = vld [vmem:[#allocation2 + $0x10] sm:$0xff] }
 0x3ef   :  { %v1213_v35 = vrot.slane %v1949_v5, %v2448_v20  ;;  %v2819_v20 = vld [vmem:[#allocation11_spill] sm:$0xff]  ;;  %v1229_v37 = vrot.slane %v1949_v5, %v2828_v14  ;;  %v1962_v14 = vld [vmem:[#allocation2 + $0x90] sm:$0xff] }
 0x3f0   :  { %1290 = vperm.xlu1 %1817, %v1248_v12   ;;  %1295 = vperm.xlu0 %1816, %v1249_v1   ;;  %v1265_v21 = vmul.f32 %v2524_v28, %v1205_v59  ;;  %v1264_v13 = vmul.f32 %v2573_v29, %v1205_v59  ;;  %v1267_v62 = vmul.f32 %v2536_v60, %v1209_v56 }
 0x3f1   :  { %v1266_v34 = vmul.f32 %v2579_v25, %v1209_v56  ;;  %v1269_v0 = vmul.f32 %v2551_v50, %v1213_v35  ;;  %v1268_v16 = vmul.f32 %v2589_v32, %v1213_v35  ;;  %v1217_v28 = vrot.slane %v1949_v5, %v2429_v8  ;;  %v2821_v8 = vld [vmem:[#allocation12_spill] sm:$0xff] }
 0x3f2   :  { %v1189_v60 = vrot.slane %v2693_v47, %v2818_v42  ;;  %v1221_v50 = vrot.slane %v1949_v5, %v2818_v42  ;;  %v1277_v33 = vmul.f32 %v2831_v22, %v1229_v37  ;;  %v1276_v55 = vmul.f32 %v2832_v54, %v1229_v37  ;;  %v1965_v37 = vld [vmem:[#allocation2 + $0xa8] sm:$0xff] }
 0x3f3   :  { %v1271_v10 = vmul.f32 %v2562_v17, %v1217_v28  ;;  %v1270_v29 = vmul.f32 %v2594_v51, %v1217_v28  ;;  %v2823_v17 = vld [vmem:[#allocation9_spill] sm:$0xff]  ;;  %v1954_v28 = vld [vmem:[#allocation2 + $0x20] sm:$0xff] }
 0x3f4   :  { %1300 = vperm.xlu1 %1817, %v1250_v46   ;;  %1305 = vperm.xlu0 %1816, %v1251_v44   ;;  %v1257_v25 = vmul.f32 %v2819_v20, %v1189_v60  ;;  %v1256_v40 = vmul.f32 %v2820_v61, %v1189_v60  ;;  %v1273_v32 = vmul.f32 %v2821_v8, %v1221_v50 }
 0x3f5   :  { %v1272_v4 = vmul.f32 %v2822_v39, %v1221_v50  ;;  %v1193_v51 = vrot.slane %v2693_v47, %v2823_v17  ;;  %v1225_v6 = vrot.slane %v1949_v5, %v2823_v17 }
 0x3f7   :  { %v1259_v19 = vmul.f32 %v2824_v9, %v1193_v51  ;;  %v1258_v49 = vmul.f32 %v2825_v38, %v1193_v51  ;;  %v1275_v41 = vmul.f32 %v2826_v15, %v1225_v6  ;;  %v1274_v48 = vmul.f32 %v2827_v58, %v1225_v6  ;;  %v1958_v51 = vld [vmem:[#allocation2 + $0x40] sm:$0xff]  ;;  %v1961_v15 = vld [vmem:[#allocation2 + $0x88] sm:$0xff] }
 0x3f8   :  { %1310 = vperm.xlu1 %1817, %v1252_v11   ;;  %1315 = vperm.xlu0 %1816, %v1253_v30  }
 0x3fc   :  { %1320 = vperm.xlu1 %1817, %v1254_v63   ;;  %1325 = vperm.xlu0 %1816, %v1255_v2   ;;  %v1951_v63 = vld [vmem:[#allocation2] sm:$0xff] }
 0x400   :  { %1365 = vperm.xlu0 %1816, %v1263_v3   ;;  %1360 = vperm.xlu1 %1817, %v1262_v26   ;;  %v1953_v26 = vld [vmem:[#allocation2 + $0x18] sm:$0xff] }
 0x404   :  { %1375 = vperm.xlu0 %1816, %v1265_v21   ;;  %1370 = vperm.xlu1 %1817, %v1264_v13  }
 0x408   :  { %1385 = vperm.xlu0 %1816, %v1267_v62   ;;  %1380 = vperm.xlu1 %1817, %v1266_v34  }
 0x40c   :  { %1395 = vperm.xlu0 %1816, %v1269_v0   ;;  %1390 = vperm.xlu1 %1817, %v1268_v16  }
 0x410   :  { %1405 = vperm.xlu0 %1816, %v1271_v10   ;;  %1400 = vperm.xlu1 %1817, %v1270_v29   ;;  %v1955_v29 = vld [vmem:[#allocation2 + $0x28] sm:$0xff] }
 0x414   :  { %1335 = vperm.xlu0 %1816, %v1257_v25   ;;  %1330 = vperm.xlu1 %1817, %v1256_v40  }
 0x418   :  { %1415 = vperm.xlu0 %1816, %v1273_v32   ;;  %1410 = vperm.xlu1 %1817, %v1272_v4   ;;  %v1956_v32 = vld [vmem:[#allocation2 + $0x30] sm:$0xff]  ;;  %v1957_v4 = vld [vmem:[#allocation2 + $0x38] sm:$0xff] }
 0x41c   :  { %1345 = vperm.xlu0 %1816, %v1259_v19   ;;  %1340 = vperm.xlu1 %1817, %v1258_v49   ;;  %v1959_v19 = vld [vmem:[#allocation2 + $0x48] sm:$0xff]  ;;  %v1960_v49 = vld [vmem:[#allocation2 + $0x80] sm:$0xff] }
 0x420   :  { %1425 = vperm.xlu0 %1816, %v1275_v41   ;;  %1420 = vperm.xlu1 %1817, %v1274_v48  }
 0x424   :  { %1355 = vperm.xlu0 %1816, %v1261_v52   ;;  %1350 = vperm.xlu1 %1817, %v1260_v57  }
 0x428   :  { %1435 = vperm.xlu0 %1816, %v1277_v33   ;;  %1430 = vperm.xlu1 %1817, %v1276_v55   ;;  %v1966_v33 = vld [vmem:[#allocation2 + $0xb0] sm:$0xff]  ;;  %v1967_v55 = vld [vmem:[#allocation2 + $0xb8] sm:$0xff] }
 0x46b   :  { %v1286_v31 = vpop.permute.xlu1 %1285  ;;  %v1281_v53 = vpop.permute.xlu0 %1280 }
 0x46c   :  { %v1439_v5 = vmul.f32 %v1950_v7, %v1286_v31  ;;  %v1438_v2 = vmul.f32 %v1951_v63, %v1281_v53 }
 0x46e   :  { %v1470_v56 = vadd.f32 %v1439_v5, %v1438_v2  ;;  %v1971_v5 = vld [vmem:[#allocation2 + $0x58] sm:$0xff] }
 0x46f   :  { %v1291_v45 = vpop.permute.xlu1 %1290  ;;  %v1296_v47 = vpop.permute.xlu0 %1295 }
 0x470   :  { %v1440_v3 = vmul.f32 %v1952_v43, %v1291_v45  ;;  %v1441_v59 = vmul.f32 %v1953_v26, %v1296_v47  ;;  %v1471_v0 = vrot.slane %v1470_v56, 4 }
 0x472   :  { %v1477_v62 = vadd.f32 %v1441_v59, %v1440_v3  ;;  %v1472_v25 = vadd.f32 %v1471_v0, %v1470_v56  ;;  %v1973_v0 = vld [vmem:[#allocation2 + $0xd8] sm:$0xff] }
 0x473   :  { %v1301_v12 = vpop.permute.xlu1 %1300  ;;  %v1306_v1 = vpop.permute.xlu0 %1305 }
 0x474   :  { %v1478_v16 = vrot.slane %v1477_v62, 4  ;;  %v1442_v10 = vmul.f32 %v1954_v28, %v1301_v12  ;;  %v1443_v42 = vmul.f32 %v1955_v29, %v1306_v1  ;;  %v1473_v58 = vrot.slane %v1472_v25, 2 }
 0x476   :  { %v1479_v61 = vadd.f32 %v1478_v16, %v1477_v62  ;;  %v1484_v40 = vadd.f32 %v1443_v42, %v1442_v10  ;;  %v1474_v2 = vadd.f32 %v1473_v58, %v1472_v25 }
 0x477   :  { %v1311_v18 = vpop.permute.xlu1 %1310  ;;  %v1316_v46 = vpop.permute.xlu0 %1315 }
 0x478   :  { %v1444_v39 = vmul.f32 %v1956_v32, %v1311_v18  ;;  %v1445_v17 = vmul.f32 %v1957_v4, %v1316_v46  ;;  %v1480_v48 = vrot.slane %v1479_v61, 2  ;;  %v1485_v47 = vrot.slane %v1484_v40, 4  ;;  %v1968_v18 = vld [vmem:[#allocation2 + $0x50] sm:$0xff] }
 0x47a   :  { %v1491_v12 = vadd.f32 %v1445_v17, %v1444_v39  ;;  %v1481_v3 = vadd.f32 %v1480_v48, %v1479_v61  ;;  %v1486_v62 = vadd.f32 %v1485_v47, %v1484_v40 }
 0x47b   :  { %v1321_v44 = vpop.permute.xlu1 %1320  ;;  %v1326_v36 = vpop.permute.xlu0 %1325 }
 0x47c   :  { %v1446_v9 = vmul.f32 %v1958_v51, %v1321_v44  ;;  %v1447_v38 = vmul.f32 %v1959_v19, %v1326_v36  ;;  %v1969_v36 = vld [vmem:[#allocation2 + $0xc0] sm:$0xff]  ;;  %v1492_v28 = vrot.slane %v1491_v12, 4  ;;  %v1482_v25 = vrot.slane %v1481_v3, 1 }
 0x47d   :  { %v1487_v17 = vrot.slane %v1486_v62, 2  ;;  %v1974_v51 = vld [vmem:[#allocation2 + $0x60] sm:$0xff] }
 0x47e   :  { %v1498_v1 = vadd.f32 %v1447_v38, %v1446_v9  ;;  %v1975_v9 = vld [vmem:[#allocation2 + $0x68] sm:$0xff]  ;;  %v1493_v38 = vadd.f32 %v1492_v28, %v1491_v12 }
 0x47f   :  { %v1361_v11 = vpop.permute.xlu1 %1360  ;;  %v1366_v30 = vpop.permute.xlu0 %1365 }
 0x480   :  { %v1454_v6 = vmul.f32 %v1960_v49, %v1361_v11  ;;  %v1455_v41 = vmul.f32 %v1961_v15, %v1366_v30  ;;  %v1970_v30 = vld [vmem:[#allocation2 + $0xc8] sm:$0xff]  ;;  %v1499_v10 = vrot.slane %v1498_v1, 4 }
 0x482   :  { %v1526_v44 = vadd.f32 %v1455_v41, %v1454_v6  ;;  %v1500_v49 = vadd.f32 %v1499_v10, %v1498_v1 }
 0x483   :  { %v1371_v21 = vpop.permute.xlu1 %1370  ;;  %v1376_v13 = vpop.permute.xlu0 %1375 }
 0x484   :  { %v1456_v23 = vmul.f32 %v1962_v14, %v1371_v21  ;;  %v1457_v52 = vmul.f32 %v1963_v24, %v1376_v13  ;;  %v1527_v29 = vrot.slane %v1526_v44, 4  ;;  %v1501_v47 = vrot.slane %v1500_v49, 2 }
 0x486   :  { %v1533_v43 = vadd.f32 %v1457_v52, %v1456_v23  ;;  %v1528_v6 = vadd.f32 %v1527_v29, %v1526_v44  ;;  %v1483_v23 = vadd.f32 %v1482_v25, %v1481_v3 }
 0x487   :  { %v1381_v34 = vpop.permute.xlu1 %1380  ;;  %v1386_v35 = vpop.permute.xlu0 %1385 }
 0x488   :  { %v1458_v57 = vmul.f32 %v1964_v27, %v1381_v34  ;;  %v1459_v22 = vmul.f32 %v1965_v37, %v1386_v35  ;;  %v1972_v34 = vld [vmem:[#allocation2 + $0xd0] sm:$0xff]  ;;  %v1529_v12 = vrot.slane %v1528_v6, 2 }
 0x48a   :  { %v1540_v26 = vadd.f32 %v1459_v22, %v1458_v57  ;;  %v1488_v22 = vadd.f32 %v1487_v17, %v1486_v62 }
 0x48b   :  { %v1391_v60 = vpop.permute.xlu1 %1390  ;;  %v1396_v20 = vpop.permute.xlu0 %1395 }
 0x48c   :  { %v1460_v54 = vmul.f32 %v1966_v33, %v1391_v60  ;;  %v1461_v31 = vmul.f32 %v1967_v55, %v1396_v20  ;;  %v1475_v60 = vrot.slane %v1474_v2, 1  ;;  %v1534_v20 = vrot.slane %v1533_v43, 4 }
 0x48e   :  { %v1547_v59 = vadd.f32 %v1461_v31, %v1460_v54  ;;  %v1476_v41 = vadd.f32 %v1475_v60, %v1474_v2  ;;  %v1535_v58 = vadd.f32 %v1534_v20, %v1533_v43  ;;  %v1976_v54 = vld [vmem:[#allocation2 + $0xe0] sm:$0xff]  ;;  %v1977_v31 = vld [vmem:[#allocation2 + $0xe8] sm:$0xff]  ;;  %v1489_v43 = vrot.slane %v1488_v22, 1 }
 0x48f   :  { %v1401_v50 = vpop.permute.xlu1 %1400  ;;  %v1406_v8 = vpop.permute.xlu0 %1405 }
 0x490   :  { %v1462_v11 = vmul.f32 %v1969_v36, %v1401_v50  ;;  %v1463_v7 = vmul.f32 %v1970_v30, %v1406_v8  ;;  %v1541_v8 = vrot.slane %v1540_v26, 4  ;;  %v1548_v61 = vrot.slane %v1547_v59, 4 }
 0x492   :  { %v1554_v42 = vadd.f32 %v1463_v7, %v1462_v11  ;;  %v1542_v24 = vadd.f32 %v1541_v8, %v1540_v26  ;;  %v1549_v52 = vadd.f32 %v1548_v61, %v1547_v59  ;;  %v1598_v11 = vsel %vm660_vm2, %v1483_v23, %v1476_v41  ;;  %v1978_v59 = vld [vmem:[#allocation2 + $0x70] sm:$0xff] }
 0x493   :  { %v1331_v53 = vpop.permute.xlu1 %1330  ;;  %v1336_v45 = vpop.permute.xlu0 %1335 }
 0x494   :  { %v1448_v46 = vmul.f32 %v1968_v18, %v1331_v53  ;;  %v1449_v63 = vmul.f32 %v1971_v5, %v1336_v45  ;;  %v1555_v15 = vrot.slane %v1554_v42, 4  ;;  %v1494_v45 = vrot.slane %v1493_v38, 2 }
 0x495   :  { %v1536_v18 = vrot.slane %v1535_v58, 2  ;;  %v1543_v30 = vrot.slane %v1542_v24, 2  ;;  %v1550_v7 = vrot.slane %v1549_v52, 2 }
 0x496   :  { %v1505_v21 = vadd.f32 %v1449_v63, %v1448_v46  ;;  %v1556_v1 = vadd.f32 %v1555_v15, %v1554_v42 }
 0x497   :  { %v1411_v13 = vpop.permute.xlu1 %1410  ;;  %v1416_v56 = vpop.permute.xlu0 %1415  ;;  %v1544_v29 = vadd.f32 %v1543_v30, %v1542_v24  ;;  %v1551_v42 = vadd.f32 %v1550_v7, %v1549_v52 }
 0x498   :  { %v1464_v35 = vmul.f32 %v1972_v34, %v1411_v13  ;;  %v1465_v16 = vmul.f32 %v1973_v0, %v1416_v56  ;;  %v1506_v32 = vrot.slane %v1505_v21, 4  ;;  %v1495_v13 = vadd.f32 %v1494_v45, %v1493_v38  ;;  %v1979_v34 = vld [vmem:[#allocation2 + $0x78] sm:$0xff] }
 0x499   :  { %v1502_v56 = vadd.f32 %v1501_v47, %v1500_v49  ;;  %v1557_v62 = vrot.slane %v1556_v1, 2  ;;  %v1530_v0 = vadd.f32 %v1529_v12, %v1528_v6  ;;  %v1545_v41 = vrot.slane %v1544_v29, 1 }
 0x49a   :  { %v1561_v50 = vadd.f32 %v1465_v16, %v1464_v35  ;;  %v1507_v27 = vadd.f32 %v1506_v32, %v1505_v21  ;;  %v1537_v16 = vadd.f32 %v1536_v18, %v1535_v58  ;;  %v1980_v32 = vld [vmem:[#allocation2 + $0xf0] sm:$0xff]  ;;  %v1552_v24 = vrot.slane %v1551_v42, 1 }
 0x49b   :  { %v1341_v39 = vpop.permute.xlu1 %1340  ;;  %v1346_v4 = vpop.permute.xlu0 %1345  ;;  %v1503_v38 = vrot.slane %v1502_v56, 1  ;;  %v1531_v23 = vrot.slane %v1530_v0, 1  ;;  %v1546_v45 = vadd.f32 %v1545_v41, %v1544_v29 }
 0x49c   :  { %v1450_v40 = vmul.f32 %v1974_v51, %v1341_v39  ;;  %v1451_v19 = vmul.f32 %v1975_v9, %v1346_v4  ;;  %v1562_v48 = vrot.slane %v1561_v50, 4  ;;  %v1508_v5 = vrot.slane %v1507_v27, 2  ;;  %v1981_v4 = vld [vmem:[#allocation2 + $0xf8] sm:$0xff] }
 0x49d   :  { %v1490_v51 = vadd.f32 %v1489_v43, %v1488_v22  ;;  %v1558_v9 = vadd.f32 %v1557_v62, %v1556_v1  ;;  %v1538_v49 = vrot.slane %v1537_v16, 1  ;;  %v1532_v18 = vadd.f32 %v1531_v23, %v1530_v0 }
 0x49e   :  { %v1512_v14 = vadd.f32 %v1451_v19, %v1450_v40  ;;  %v1563_v46 = vadd.f32 %v1562_v48, %v1561_v50  ;;  %v1509_v60 = vadd.f32 %v1508_v5, %v1507_v27  ;;  %v1496_v40 = vrot.slane %v1495_v13, 1 }
 0x49f   :  { %v1421_v57 = vpop.permute.xlu1 %1420  ;;  %v1426_v37 = vpop.permute.xlu0 %1425 }
 0x4a0   :  { %v1513_v33 = vrot.slane %v1512_v14, 4  ;;  %v1466_v55 = vmul.f32 %v1976_v54, %v1421_v57  ;;  %v1467_v53 = vmul.f32 %v1977_v31, %v1426_v37  ;;  %v1564_v28 = vrot.slane %v1563_v46, 2 }
 0x4a1   :  { %v1510_v58 = vrot.slane %v1509_v60, 1  ;;  %v1599_v57 = vsel %vm662_vm3, %v1490_v51, %v1598_v11  ;;  %v1497_v37 = vadd.f32 %v1496_v40, %v1495_v13  ;;  %v1504_v54 = vadd.f32 %v1503_v38, %v1502_v56 }
 0x4a2   :  { %v1514_v44 = vadd.f32 %v1513_v33, %v1512_v14  ;;  %v1568_v36 = vadd.f32 %v1467_v53, %v1466_v55  ;;  %v1565_v6 = vadd.f32 %v1564_v28, %v1563_v46  ;;  %v1559_v33 = vrot.slane %v1558_v9, 1 }
 0x4a3   :  { %v1351_v63 = vpop.permute.xlu1 %1350  ;;  %v1356_v2 = vpop.permute.xlu0 %1355  ;;  %v1539_v55 = vadd.f32 %v1538_v49, %v1537_v16  ;;  %v1511_v47 = vadd.f32 %v1510_v58, %v1509_v60  ;;  %v1553_v46 = vadd.f32 %v1552_v24, %v1551_v42  ;;  %v1600_v30 = vsel %vm664_vm4, %v1497_v37, %v1599_v57 }
 0x4a4   :  { %v1515_v3 = vrot.slane %v1514_v44, 2  ;;  %v1569_v26 = vrot.slane %v1568_v36, 4  ;;  %v1452_v21 = vmul.f32 %v1978_v59, %v1351_v63  ;;  %v1453_v35 = vmul.f32 %v1979_v34, %v1356_v2 }
 0x4a5   :  { %v1566_v31 = vrot.slane %v1565_v6, 1  ;;  %v1560_v7 = vadd.f32 %v1559_v33, %v1558_v9  ;;  %v1605_v11 = vsel %vm660_vm2, %v1539_v55, %v1532_v18  ;;  %v1601_v43 = vsel %vm666_vm5, %v1504_v54, %v1600_v30 }
 0x4a6   :  { %v1570_v10 = vadd.f32 %v1569_v26, %v1568_v36  ;;  %v1519_v20 = vadd.f32 %v1453_v35, %v1452_v21  ;;  %v1516_v8 = vadd.f32 %v1515_v3, %v1514_v44  ;;  %v1606_v3 = vsel %vm662_vm3, %v1546_v45, %v1605_v11 }
 0x4a7   :  { %v1431_v50 = vpop.permute.xlu1 %1430  ;;  %v1436_v25 = vpop.permute.xlu0 %1435  ;;  %v1567_v63 = vadd.f32 %v1566_v31, %v1565_v6  ;;  %v1602_v21 = vsel %vm668_vm6, %v1511_v47, %v1601_v43  ;;  %v1607_v13 = vsel %vm664_vm4, %v1553_v46, %v1606_v3 }
 0x4a8   :  { %v1571_v61 = vrot.slane %v1570_v10, 2  ;;  %v1468_v39 = vmul.f32 %v1980_v32, %v1431_v50  ;;  %v1469_v17 = vmul.f32 %v1981_v4, %v1436_v25  ;;  %v1520_v19 = vrot.slane %v1519_v20, 4 }
 0x4a9   :  { %v1517_v52 = vrot.slane %v1516_v8, 1  ;;  %v1608_v35 = vsel %vm666_vm5, %v1560_v7, %v1607_v13 }
 0x4aa   :  { %v1575_v15 = vadd.f32 %v1469_v17, %v1468_v39  ;;  %v1572_v48 = vadd.f32 %v1571_v61, %v1570_v10  ;;  %v1521_v14 = vadd.f32 %v1520_v19, %v1519_v20  ;;  %v1609_v16 = vsel %vm668_vm6, %v1567_v63, %v1608_v35 }
 0x4ab   :  { %v1518_v44 = vadd.f32 %v1517_v52, %v1516_v8 }
 0x4ac   :  { %v1576_v27 = vrot.slane %v1575_v15, 4  ;;  %v1522_v22 = vrot.slane %v1521_v14, 2  ;;  %v1573_v12 = vrot.slane %v1572_v48, 1 }
 0x4ad   :  { %v1603_v62 = vsel %vm670_vm7, %v1518_v44, %v1602_v21 }
 0x4ae   :  { %v1577_v53 = vadd.f32 %v1576_v27, %v1575_v15  ;;  %v1523_v1 = vadd.f32 %v1522_v22, %v1521_v14  ;;  %v1574_v26 = vadd.f32 %v1573_v12, %v1572_v48 }
 0x4b0   :  { %v1578_v36 = vrot.slane %v1577_v53, 2  ;;  %v1524_v5 = vrot.slane %v1523_v1, 1  ;;  %v1610_v28 = vsel %vm670_vm7, %v1574_v26, %v1609_v16 }
 0x4b2   :  { %v1579_v2 = vadd.f32 %v1578_v36, %v1577_v53  ;;  %v1525_v59 = vadd.f32 %v1524_v5, %v1523_v1 }
 0x4b4   :  { %v1580_v56 = vrot.slane %v1579_v2, 1  ;;  %v1604_v34 = vsel %vm672_vm8, %v1525_v59, %v1603_v62 }
 0x4b5   :  { %1614 = vst [vmem:[#allocation5] sm:$0xff] %v1604_v34 }
 0x4b6   :  { %v1581_v0 = vadd.f32 %v1580_v56, %v1579_v2 }
 0x4b8   :  { %v1611_v10 = vsel %vm672_vm8, %v1581_v0, %v1610_v28 }
 0x4b9   :  { %1615 = vst [vmem:[#allocation5 + $0x8] sm:$0xff] %v1611_v10 }
 0x4ba   :  { %2015 = shalt.err (!%p2012_p12)
}
 0x4bb   :  { %s2016_s15 = scalar_lea.hbm %s2784_s4, 256 }
 0x4bc   :  { %p2017_p13 = scmp.ne.s32.totalorder %s2784_s4, %s2016_s15  ;;  %p2020_p0 = scmp.lt.u32.totalorder %s2016_s15, %s2784_s4 }
 0x4be   :  { %p2022_p1 = pnand %p2020_p0, %p2017_p13 }
 0x4c0   :  { %2025 = shalt.err (!%p2022_p1)
}
 0x4c1   :  { %1627 = dma.vmem_to_hbm [thread:$0]  %s1622_s11, 256, %s2784_s4, [#allocation4], %s2031_s25, %s2031_s25, %s2032_s26  }
 0x4c2   :  { %2028 = dma.done.wait [#allocation4], 256  }
 0x4c3   :  { %2029 = vsyncadd [#allocation4], 4294967040 }
 0x4c4   :  { %1631 = vsyncpa [#allocation3], 1 }
 0x4c5   :  { %1632 = vsyncpa [#allocation4], 1 }

</bundles_post_ra>
